<compile_context>
chip_gen: v6e
topology: v6e:2x2x1
jax: 0.10.0
libtpu: 0.0.40
codegen_flags: <defaults>
</compile_context>

<pallas_src>
import numpy as np
import jax
import jax.numpy as jnp
from jax.experimental import pallas as pl
from jax.experimental.pallas import tpu as pltpu


def _centered_dft_matrix(nx):
    """Matrix of the 1-D centered orthonormal FFT: v -> fftshift(fft(ifftshift(v))) / sqrt(nx)."""
    eye = np.eye(nx, dtype=np.complex128)
    fc = np.fft.fftshift(np.fft.fft(np.fft.ifftshift(eye, axes=0), axis=0), axes=0)
    return fc / np.sqrt(nx)


def _auv_kernel(xr_ref, xi_ref, cr_ref, ci_ref, kr_ref, ki_ref, ks_ref,
                mkr_ref, mki_ref, or_ref, oi_ref, yr_s, yi_s):
    """One grid step = (one receive coil, one NF tile)."""
    f = pl.program_id(1)

    # --- per coil (first NF tile only): coil multiply + centered 2D FFT --------
    @pl.when(f == 0)
    def _():
        xr = xr_ref[...]                       # (nbas, nx*nx)  lane-dense f32
        xi = xi_ref[...]
        cr = cr_ref[...][0]                    # (1, nx*nx), broadcast over basis
        ci = ci_ref[...][0]
        # complex pointwise coil multiply (VPU, f32, lane-dense)
        mr = xr * cr - xi * ci
        mi = xr * ci + xi * cr
        # centered 2D FFT as ONE Kronecker-flattened complex matmul.
        # Gauss 3-mult trick: 3 bf16 MXU matmuls, f32 accumulation.
        mr_b = mr.astype(jnp.bfloat16)
        mi_b = mi.astype(jnp.bfloat16)
        ms_b = (mr + mi).astype(jnp.bfloat16)
        t1 = jnp.dot(mr_b, kr_ref[...], preferred_element_type=jnp.float32)
        t2 = jnp.dot(mi_b, ki_ref[...], preferred_element_type=jnp.float32)
        t3 = jnp.dot(ms_b, ks_ref[...], preferred_element_type=jnp.float32)
        yr_s[...] = t1 - t2                    # real(fft2c)
        yi_s[...] = t3 - t1 - t2               # imag(fft2c)

    # --- mask-weighted reduction over the basis axis for this NF tile ----------
    #   out[f, p] = sum_b mask[f, b, p] * y[b, p]
    # accumulated basis-by-basis so the peak temporary is (tile_NF, nx*nx), never
    # (tile_NF, nbas, nx*nx).
    mkr = mkr_ref[...]                         # (tile_NF, nbas, nx*nx)
    mki = mki_ref[...]
    yr = yr_s[...]                             # (nbas, nx*nx)
    yi = yi_s[...]
    nbas = yr.shape[0]
    tile_nf, npix = mkr.shape[0], mkr.shape[2]
    acc_r = jnp.zeros((tile_nf, npix), jnp.float32)
    acc_i = jnp.zeros((tile_nf, npix), jnp.float32)
    for b in range(nbas):                      # nbas is small & static
        acc_r = acc_r + mkr[:, b, :] * yr[b:b + 1, :]
        acc_i = acc_i + mki[:, b, :] * yi[b:b + 1, :]
    or_ref[...] = acc_r[None]
    oi_ref[...] = acc_i[None]


def _choose_nf_tile(NF, nbas, NXpix, budget_bytes=4 << 20):
    """Largest layout-friendly divisor of NF whose mask tile fits the VMEM budget."""
    per_frame = 2 * nbas * NXpix * 4           # re + im, f32
    if NF * per_frame <= budget_bytes:
        return NF
    for t in range(NF, 0, -1):                 # prefer tiles that keep (8,128)-friendly blocks
        if NF % t == 0 and t * per_frame <= budget_bytes and (t % 8 == 0 or t == NF):
            return t
    for t in range(NF, 0, -1):
        if NF % t == 0 and t * per_frame <= budget_bytes:
            return t
    return 1


def _vmem_limit_bytes(nbas, NXpix, tile_nf):
    f32, bf16 = 4, 2
    resident = 0
    resident += 2 * 2 * nbas * NXpix * f32            # xr, xi (double-buffered)
    resident += 2 * 2 * NXpix * f32                   # coil-map blocks
    resident += 2 * 3 * NXpix * NXpix * bf16          # kr, ki, ks
    resident += 2 * 2 * tile_nf * nbas * NXpix * f32  # mask tiles
    resident += 2 * 2 * tile_nf * NXpix * f32         # output tiles
    resident += 2 * nbas * NXpix * f32                # FFT scratch
    return int(min(max(2 * resident + (2 << 20), 16 << 20), 64 << 20))


def auv_forward(x, mask, csmT):
    """Pallas implementation of AUV.forward(x, mask) -> (nch, NF, nx*nx*2) float32."""
    nch, nx = csmT.shape[0], csmT.shape[1]
    nbas = x.shape[0]
    NXpix = nx * nx
    NX = NXpix * 2
    NF = mask.shape[0]
    assert x.shape == (nbas, NX)
    assert mask.shape == (NF, nbas, NX)
    # TODO(synk): for large nx (>=128) the (nx^2, nx^2) Kronecker matrix is too big;
    # that regime needs the two-pass Fc @ M @ Fc^T formulation instead.
    assert NXpix <= 4096, "Kronecker FFT path is intended for small nx"

    # split interleaved complex into lane-dense real / imag planes (wrapper glue)
    x3 = x.reshape(nbas, NXpix, 2)
    xr, xi = x3[..., 0], x3[..., 1]                          # (nbas, NXpix)
    csm3 = csmT.reshape(nch, 1, NXpix, 2)
    cr, ci = csm3[..., 0], csm3[..., 1]                      # (nch, 1, NXpix)
    mask4 = mask.reshape(NF, nbas, NXpix, 2)
    mkr, mki = mask4[..., 0], mask4[..., 1]                  # (NF, nbas, NXpix)

    # host-side centered 2D DFT as a single flattened matrix: Y_flat = M_flat @ K^T
    fc = _centered_dft_matrix(nx)
    Kt = np.kron(fc, fc).T
    kr = jnp.asarray(Kt.real, dtype=jnp.bfloat16)
    ki = jnp.asarray(Kt.imag, dtype=jnp.bfloat16)
    ks = jnp.asarray(Kt.real + Kt.imag, dtype=jnp.bfloat16)  # for the Gauss trick

    tile_nf = _choose_nf_tile(NF, nbas, NXpix)
    assert NF % tile_nf == 0
    n_nf_tiles = NF // tile_nf

    grid_spec = pltpu.PrefetchScalarGridSpec(
        num_scalar_prefetch=0,
        grid=(nch, n_nf_tiles),
        in_specs=[
            pl.BlockSpec((nbas, NXpix), lambda i, f: (0, 0)),            # xr
            pl.BlockSpec((nbas, NXpix), lambda i, f: (0, 0)),            # xi
            pl.BlockSpec((1, 1, NXpix), lambda i, f: (i, 0, 0)),         # coil map real
            pl.BlockSpec((1, 1, NXpix), lambda i, f: (i, 0, 0)),         # coil map imag
            pl.BlockSpec((NXpix, NXpix), lambda i, f: (0, 0)),           # K^T real (bf16)
            pl.BlockSpec((NXpix, NXpix), lambda i, f: (0, 0)),           # K^T imag (bf16)
            pl.BlockSpec((NXpix, NXpix), lambda i, f: (0, 0)),           # K^T real+imag (bf16)
            pl.BlockSpec((tile_nf, nbas, NXpix), lambda i, f: (f, 0, 0)),  # mask real tile
            pl.BlockSpec((tile_nf, nbas, NXpix), lambda i, f: (f, 0, 0)),  # mask imag tile
        ],
        out_specs=[
            pl.BlockSpec((1, tile_nf, NXpix), lambda i, f: (i, f, 0)),   # out real
            pl.BlockSpec((1, tile_nf, NXpix), lambda i, f: (i, f, 0)),   # out imag
        ],
        scratch_shapes=[
            pltpu.VMEM((nbas, NXpix), jnp.float32),                      # FFT real (per coil)
            pltpu.VMEM((nbas, NXpix), jnp.float32),                      # FFT imag (per coil)
        ],
    )
    out_shape = (jax.ShapeDtypeStruct((nch, NF, NXpix), jnp.float32),
                 jax.ShapeDtypeStruct((nch, NF, NXpix), jnp.float32))

    out_r, out_i = pl.pallas_call(
        _auv_kernel,
        out_shape=out_shape,
        grid_spec=grid_spec,
        compiler_params=pltpu.CompilerParams(
            dimension_semantics=("parallel", "arbitrary"),
            vmem_limit_bytes=_vmem_limit_bytes(nbas, NXpix, tile_nf),
        ),
    )(xr, xi, cr, ci, kr, ki, ks, mkr, mki)

    # Re-interleave re/im to match the torch tmp5 layout (nch, NF, nx*nx*2).
    # TODO(synk): downstream code that accepts split re/im planes can skip this
    # extra HBM round-trip; the original module's .cpu() host transfer is omitted.
    return jnp.stack([out_r, out_i], axis=-1).reshape(nch, NF, NX)


def _reference(x, mask, csmT):
    """Pure-JAX reference (jnp.fft) for correctness checking."""
    nch, nx = csmT.shape[0], csmT.shape[1]
    nbas = x.shape[0]
    x4 = x.reshape(nbas, nx, nx, 2)
    xc = x4[..., 0] + 1j * x4[..., 1]
    outs = []
    for i in range(nch):
        cc = csmT[i, ..., 0] + 1j * csmT[i, ..., 1]
        m = xc * cc[None]
        y = jnp.fft.fftshift(
            jnp.fft.fft2(jnp.fft.ifftshift(m, axes=(-2, -1)), norm='ortho'),
            axes=(-2, -1))
        yf = jnp.stack([jnp.real(y), jnp.imag(y)], axis=-1).reshape(nbas, nx * nx * 2)
        outs.append((yf[None].astype(jnp.float32) * mask).sum(axis=1))
    return jnp.stack(outs, axis=0)


if __name__ == "__main__":
    # small shapes consistent with the module: nch coils, nbas basis images,
    # NF frames (bat_sz), nx x nx images stored as interleaved complex.
    nx, nbas, NF, nch = 16, 8, 2, 4
    NX = nx * nx * 2

    key = jax.random.PRNGKey(0)
    k1, k2, k3 = jax.random.split(key, 3)
    x = jax.random.normal(k1, (nbas, NX), dtype=jnp.float32)
    mask = jax.random.normal(k2, (NF, nbas, NX), dtype=jnp.float32)
    csmT = jax.random.normal(k3, (nch, nx, nx, 2), dtype=jnp.float32)

    out = jax.block_until_ready(auv_forward(x, mask, csmT))
    ref = jax.block_until_ready(_reference(x, mask, csmT))

    out_np = np.asarray(out, dtype=np.float32)
    ref_np = np.asarray(ref, dtype=np.float32)
    rel_l2 = np.linalg.norm(out_np - ref_np) / np.linalg.norm(ref_np)
    assert rel_l2 < 1e-2, f"relative L2 error too large: {rel_l2}"
    # element-wise tolerance is loosened vs the f32 version because the MXU
    # operands are cast to bf16 (f32 accumulation) for ~2x matmul throughput.
    np.testing.assert_allclose(out_np, ref_np, rtol=5e-2, atol=5e-2)

    print("KERNEL_OK")
</pallas_src>

<mosaic_0001>
module attributes {stable_mosaic.version = 11 : i64} {
  func.func @_auv_kernel(%arg0: i32, %arg1: i32, %arg2: memref<8x256xf32, #tpu.memory_space<vmem>>, %arg3: memref<8x256xf32, #tpu.memory_space<vmem>>, %arg4: memref<1x1x256xf32, #tpu.memory_space<vmem>>, %arg5: memref<1x1x256xf32, #tpu.memory_space<vmem>>, %arg6: memref<256x256xbf16, #tpu.memory_space<vmem>>, %arg7: memref<256x256xbf16, #tpu.memory_space<vmem>>, %arg8: memref<256x256xbf16, #tpu.memory_space<vmem>>, %arg9: memref<2x8x256xf32, #tpu.memory_space<vmem>>, %arg10: memref<2x8x256xf32, #tpu.memory_space<vmem>>, %arg11: memref<1x2x256xf32, #tpu.memory_space<vmem>>, %arg12: memref<1x2x256xf32, #tpu.memory_space<vmem>>, %arg13: memref<8x256xf32, #tpu.memory_space<vmem>>, %arg14: memref<8x256xf32, #tpu.memory_space<vmem>>) attributes {dimension_semantics = [#tpu.dimension_semantics<parallel>, #tpu.dimension_semantics<arbitrary>], iteration_bounds = array<i64: 4, 1>, scalar_prefetch = 0 : i64, scratch_operands = 2 : i64, tpu.core_type = #tpu.core_type<tc>, window_params = [{pipeline_mode = #tpu.pipeline_mode<synchronous>, transform_indices = @transform_0, window_bounds = array<i64: 8, 256>}, {pipeline_mode = #tpu.pipeline_mode<synchronous>, transform_indices = @transform_1, window_bounds = array<i64: 8, 256>}, {transform_indices = @transform_2, window_bounds = array<i64: 1, 1, 256>}, {transform_indices = @transform_3, window_bounds = array<i64: 1, 1, 256>}, {pipeline_mode = #tpu.pipeline_mode<synchronous>, transform_indices = @transform_4, window_bounds = array<i64: 256, 256>}, {pipeline_mode = #tpu.pipeline_mode<synchronous>, transform_indices = @transform_5, window_bounds = array<i64: 256, 256>}, {pipeline_mode = #tpu.pipeline_mode<synchronous>, transform_indices = @transform_6, window_bounds = array<i64: 256, 256>}, {transform_indices = @transform_7, window_bounds = array<i64: 2, 8, 256>}, {transform_indices = @transform_8, window_bounds = array<i64: 2, 8, 256>}, {transform_indices = @transform_9, window_bounds = array<i64: 1, 2, 256>}, {transform_indices = @transform_10, window_bounds = array<i64: 1, 2, 256>}]} {
    %c0_i32 = arith.constant 0 : i32
    %0 = arith.cmpi eq, %arg1, %c0_i32 : i32
    %1 = arith.extui %0 : i1 to i32
    %c0_i32_0 = arith.constant 0 : i32
    %2 = arith.cmpi ne, %1, %c0_i32_0 : i32
    scf.if %2 {
      %c0_17 = arith.constant 0 : index
      %c0_18 = arith.constant 0 : index
      %109 = vector.load %arg2[%c0_17, %c0_18] : memref<8x256xf32, #tpu.memory_space<vmem>>, vector<8x256xf32>
      %c0_19 = arith.constant 0 : index
      %c0_20 = arith.constant 0 : index
      %110 = vector.load %arg3[%c0_19, %c0_20] : memref<8x256xf32, #tpu.memory_space<vmem>>, vector<8x256xf32>
      %c0_21 = arith.constant 0 : index
      %c0_22 = arith.constant 0 : index
      %c0_23 = arith.constant 0 : index
      %111 = vector.load %arg4[%c0_21, %c0_22, %c0_23] : memref<1x1x256xf32, #tpu.memory_space<vmem>>, vector<1x1x256xf32>
      %112 = vector.shape_cast %111 : vector<1x1x256xf32> to vector<1x256xf32>
      %c0_24 = arith.constant 0 : index
      %c0_25 = arith.constant 0 : index
      %c0_26 = arith.constant 0 : index
      %113 = vector.load %arg5[%c0_24, %c0_25, %c0_26] : memref<1x1x256xf32, #tpu.memory_space<vmem>>, vector<1x1x256xf32>
      %114 = vector.shape_cast %113 : vector<1x1x256xf32> to vector<1x256xf32>
      %115 = vector.broadcast %112 : vector<1x256xf32> to vector<8x256xf32>
      %116 = arith.mulf %109, %115 : vector<8x256xf32>
      %117 = vector.broadcast %114 : vector<1x256xf32> to vector<8x256xf32>
      %118 = arith.mulf %110, %117 : vector<8x256xf32>
      %119 = arith.subf %116, %118 : vector<8x256xf32>
      %120 = vector.broadcast %114 : vector<1x256xf32> to vector<8x256xf32>
      %121 = arith.mulf %109, %120 : vector<8x256xf32>
      %122 = vector.broadcast %112 : vector<1x256xf32> to vector<8x256xf32>
      %123 = arith.mulf %110, %122 : vector<8x256xf32>
      %124 = arith.addf %121, %123 : vector<8x256xf32>
      %125 = arith.truncf %119 : vector<8x256xf32> to vector<8x256xbf16>
      %126 = arith.truncf %124 : vector<8x256xf32> to vector<8x256xbf16>
      %127 = arith.addf %119, %124 : vector<8x256xf32>
      %128 = arith.truncf %127 : vector<8x256xf32> to vector<8x256xbf16>
      %c0_27 = arith.constant 0 : index
      %c0_28 = arith.constant 0 : index
      %129 = vector.load %arg6[%c0_27, %c0_28] : memref<256x256xbf16, #tpu.memory_space<vmem>>, vector<256x256xbf16>
      %cst_29 = arith.constant dense<0.000000e+00> : vector<8x256xf32>
      %130 = tpu.matmul %125, %129, %cst_29 {dimension_numbers = #tpu.dot_dimension_numbers<[1], [0], [0], [1], [0, 0, 1, 1], [], []>} : vector<8x256xbf16>, vector<256x256xbf16>, vector<8x256xf32> -> vector<8x256xf32>
      %c0_30 = arith.constant 0 : index
      %c0_31 = arith.constant 0 : index
      %131 = vector.load %arg7[%c0_30, %c0_31] : memref<256x256xbf16, #tpu.memory_space<vmem>>, vector<256x256xbf16>
      %cst_32 = arith.constant dense<0.000000e+00> : vector<8x256xf32>
      %132 = tpu.matmul %126, %131, %cst_32 {dimension_numbers = #tpu.dot_dimension_numbers<[1], [0], [0], [1], [0, 0, 1, 1], [], []>} : vector<8x256xbf16>, vector<256x256xbf16>, vector<8x256xf32> -> vector<8x256xf32>
      %c0_33 = arith.constant 0 : index
      %c0_34 = arith.constant 0 : index
      %133 = vector.load %arg8[%c0_33, %c0_34] : memref<256x256xbf16, #tpu.memory_space<vmem>>, vector<256x256xbf16>
      %cst_35 = arith.constant dense<0.000000e+00> : vector<8x256xf32>
      %134 = tpu.matmul %128, %133, %cst_35 {dimension_numbers = #tpu.dot_dimension_numbers<[1], [0], [0], [1], [0, 0, 1, 1], [], []>} : vector<8x256xbf16>, vector<256x256xbf16>, vector<8x256xf32> -> vector<8x256xf32>
      %135 = arith.subf %130, %132 : vector<8x256xf32>
      %c0_36 = arith.constant 0 : index
      %c0_37 = arith.constant 0 : index
      %136 = vector.load %arg13[%c0_36, %c0_37] : memref<8x256xf32, #tpu.memory_space<vmem>>, vector<8x256xf32>
      tpu.vector_store %arg13[%c0_36, %c0_37], %135 {strides = array<i32>} : memref<8x256xf32, #tpu.memory_space<vmem>>, vector<8x256xf32>,
      %137 = arith.subf %134, %130 : vector<8x256xf32>
      %138 = arith.subf %137, %132 : vector<8x256xf32>
      %c0_38 = arith.constant 0 : index
      %c0_39 = arith.constant 0 : index
      %139 = vector.load %arg14[%c0_38, %c0_39] : memref<8x256xf32, #tpu.memory_space<vmem>>, vector<8x256xf32>
      tpu.vector_store %arg14[%c0_38, %c0_39], %138 {strides = array<i32>} : memref<8x256xf32, #tpu.memory_space<vmem>>, vector<8x256xf32>,
    } else {
    }
    %c0 = arith.constant 0 : index
    %c0_1 = arith.constant 0 : index
    %c0_2 = arith.constant 0 : index
    %3 = vector.load %arg9[%c0, %c0_1, %c0_2] : memref<2x8x256xf32, #tpu.memory_space<vmem>>, vector<2x8x256xf32>
    %c0_3 = arith.constant 0 : index
    %c0_4 = arith.constant 0 : index
    %c0_5 = arith.constant 0 : index
    %4 = vector.load %arg10[%c0_3, %c0_4, %c0_5] : memref<2x8x256xf32, #tpu.memory_space<vmem>>, vector<2x8x256xf32>
    %c0_6 = arith.constant 0 : index
    %c0_7 = arith.constant 0 : index
    %5 = vector.load %arg13[%c0_6, %c0_7] : memref<8x256xf32, #tpu.memory_space<vmem>>, vector<8x256xf32>
    %c0_8 = arith.constant 0 : index
    %c0_9 = arith.constant 0 : index
    %6 = vector.load %arg14[%c0_8, %c0_9] : memref<8x256xf32, #tpu.memory_space<vmem>>, vector<8x256xf32>
    %cst = arith.constant 0.000000e+00 : f32
    %7 = vector.broadcast %cst : f32 to vector<2x256xf32>
    %cst_10 = arith.constant 0.000000e+00 : f32
    %8 = vector.broadcast %cst_10 : f32 to vector<2x256xf32>
    %9 = vector.extract_strided_slice %3 {offsets = [0, 0, 0], sizes = [2, 1, 256], strides = [1, 1, 1]} : vector<2x8x256xf32> to vector<2x1x256xf32>
    %10 = vector.shape_cast %9 : vector<2x1x256xf32> to vector<2x256xf32>
    %11 = vector.extract_strided_slice %5 {offsets = [0, 0], sizes = [1, 256], strides = [1, 1]} : vector<8x256xf32> to vector<1x256xf32>
    %12 = vector.broadcast %11 : vector<1x256xf32> to vector<2x256xf32>
    %13 = arith.mulf %10, %12 : vector<2x256xf32>
    %14 = arith.addf %7, %13 : vector<2x256xf32>
    %15 = vector.extract_strided_slice %4 {offsets = [0, 0, 0], sizes = [2, 1, 256], strides = [1, 1, 1]} : vector<2x8x256xf32> to vector<2x1x256xf32>
    %16 = vector.shape_cast %15 : vector<2x1x256xf32> to vector<2x256xf32>
    %17 = vector.extract_strided_slice %6 {offsets = [0, 0], sizes = [1, 256], strides = [1, 1]} : vector<8x256xf32> to vector<1x256xf32>
    %18 = vector.broadcast %17 : vector<1x256xf32> to vector<2x256xf32>
    %19 = arith.mulf %16, %18 : vector<2x256xf32>
    %20 = arith.addf %8, %19 : vector<2x256xf32>
    %21 = vector.extract_strided_slice %3 {offsets = [0, 1, 0], sizes = [2, 1, 256], strides = [1, 1, 1]} : vector<2x8x256xf32> to vector<2x1x256xf32>
    %22 = vector.shape_cast %21 : vector<2x1x256xf32> to vector<2x256xf32>
    %23 = vector.extract_strided_slice %5 {offsets = [1, 0], sizes = [1, 256], strides = [1, 1]} : vector<8x256xf32> to vector<1x256xf32>
    %24 = vector.broadcast %23 : vector<1x256xf32> to vector<2x256xf32>
    %25 = arith.mulf %22, %24 : vector<2x256xf32>
    %26 = arith.addf %14, %25 : vector<2x256xf32>
    %27 = vector.extract_strided_slice %4 {offsets = [0, 1, 0], sizes = [2, 1, 256], strides = [1, 1, 1]} : vector<2x8x256xf32> to vector<2x1x256xf32>
    %28 = vector.shape_cast %27 : vector<2x1x256xf32> to vector<2x256xf32>
    %29 = vector.extract_strided_slice %6 {offsets = [1, 0], sizes = [1, 256], strides = [1, 1]} : vector<8x256xf32> to vector<1x256xf32>
    %30 = vector.broadcast %29 : vector<1x256xf32> to vector<2x256xf32>
    %31 = arith.mulf %28, %30 : vector<2x256xf32>
    %32 = arith.addf %20, %31 : vector<2x256xf32>
    %33 = vector.extract_strided_slice %3 {offsets = [0, 2, 0], sizes = [2, 1, 256], strides = [1, 1, 1]} : vector<2x8x256xf32> to vector<2x1x256xf32>
    %34 = vector.shape_cast %33 : vector<2x1x256xf32> to vector<2x256xf32>
    %35 = vector.extract_strided_slice %5 {offsets = [2, 0], sizes = [1, 256], strides = [1, 1]} : vector<8x256xf32> to vector<1x256xf32>
    %36 = vector.broadcast %35 : vector<1x256xf32> to vector<2x256xf32>
    %37 = arith.mulf %34, %36 : vector<2x256xf32>
    %38 = arith.addf %26, %37 : vector<2x256xf32>
    %39 = vector.extract_strided_slice %4 {offsets = [0, 2, 0], sizes = [2, 1, 256], strides = [1, 1, 1]} : vector<2x8x256xf32> to vector<2x1x256xf32>
    %40 = vector.shape_cast %39 : vector<2x1x256xf32> to vector<2x256xf32>
    %41 = vector.extract_strided_slice %6 {offsets = [2, 0], sizes = [1, 256], strides = [1, 1]} : vector<8x256xf32> to vector<1x256xf32>
    %42 = vector.broadcast %41 : vector<1x256xf32> to vector<2x256xf32>
    %43 = arith.mulf %40, %42 : vector<2x256xf32>
    %44 = arith.addf %32, %43 : vector<2x256xf32>
    %45 = vector.extract_strided_slice %3 {offsets = [0, 3, 0], sizes = [2, 1, 256], strides = [1, 1, 1]} : vector<2x8x256xf32> to vector<2x1x256xf32>
    %46 = vector.shape_cast %45 : vector<2x1x256xf32> to vector<2x256xf32>
    %47 = vector.extract_strided_slice %5 {offsets = [3, 0], sizes = [1, 256], strides = [1, 1]} : vector<8x256xf32> to vector<1x256xf32>
    %48 = vector.broadcast %47 : vector<1x256xf32> to vector<2x256xf32>
    %49 = arith.mulf %46, %48 : vector<2x256xf32>
    %50 = arith.addf %38, %49 : vector<2x256xf32>
    %51 = vector.extract_strided_slice %4 {offsets = [0, 3, 0], sizes = [2, 1, 256], strides = [1, 1, 1]} : vector<2x8x256xf32> to vector<2x1x256xf32>
    %52 = vector.shape_cast %51 : vector<2x1x256xf32> to vector<2x256xf32>
    %53 = vector.extract_strided_slice %6 {offsets = [3, 0], sizes = [1, 256], strides = [1, 1]} : vector<8x256xf32> to vector<1x256xf32>
    %54 = vector.broadcast %53 : vector<1x256xf32> to vector<2x256xf32>
    %55 = arith.mulf %52, %54 : vector<2x256xf32>
    %56 = arith.addf %44, %55 : vector<2x256xf32>
    %57 = vector.extract_strided_slice %3 {offsets = [0, 4, 0], sizes = [2, 1, 256], strides = [1, 1, 1]} : vector<2x8x256xf32> to vector<2x1x256xf32>
    %58 = vector.shape_cast %57 : vector<2x1x256xf32> to vector<2x256xf32>
    %59 = vector.extract_strided_slice %5 {offsets = [4, 0], sizes = [1, 256], strides = [1, 1]} : vector<8x256xf32> to vector<1x256xf32>
    %60 = vector.broadcast %59 : vector<1x256xf32> to vector<2x256xf32>
    %61 = arith.mulf %58, %60 : vector<2x256xf32>
    %62 = arith.addf %50, %61 : vector<2x256xf32>
    %63 = vector.extract_strided_slice %4 {offsets = [0, 4, 0], sizes = [2, 1, 256], strides = [1, 1, 1]} : vector<2x8x256xf32> to vector<2x1x256xf32>
    %64 = vector.shape_cast %63 : vector<2x1x256xf32> to vector<2x256xf32>
    %65 = vector.extract_strided_slice %6 {offsets = [4, 0], sizes = [1, 256], strides = [1, 1]} : vector<8x256xf32> to vector<1x256xf32>
    %66 = vector.broadcast %65 : vector<1x256xf32> to vector<2x256xf32>
    %67 = arith.mulf %64, %66 : vector<2x256xf32>
    %68 = arith.addf %56, %67 : vector<2x256xf32>
    %69 = vector.extract_strided_slice %3 {offsets = [0, 5, 0], sizes = [2, 1, 256], strides = [1, 1, 1]} : vector<2x8x256xf32> to vector<2x1x256xf32>
    %70 = vector.shape_cast %69 : vector<2x1x256xf32> to vector<2x256xf32>
    %71 = vector.extract_strided_slice %5 {offsets = [5, 0], sizes = [1, 256], strides = [1, 1]} : vector<8x256xf32> to vector<1x256xf32>
    %72 = vector.broadcast %71 : vector<1x256xf32> to vector<2x256xf32>
    %73 = arith.mulf %70, %72 : vector<2x256xf32>
    %74 = arith.addf %62, %73 : vector<2x256xf32>
    %75 = vector.extract_strided_slice %4 {offsets = [0, 5, 0], sizes = [2, 1, 256], strides = [1, 1, 1]} : vector<2x8x256xf32> to vector<2x1x256xf32>
    %76 = vector.shape_cast %75 : vector<2x1x256xf32> to vector<2x256xf32>
    %77 = vector.extract_strided_slice %6 {offsets = [5, 0], sizes = [1, 256], strides = [1, 1]} : vector<8x256xf32> to vector<1x256xf32>
    %78 = vector.broadcast %77 : vector<1x256xf32> to vector<2x256xf32>
    %79 = arith.mulf %76, %78 : vector<2x256xf32>
    %80 = arith.addf %68, %79 : vector<2x256xf32>
    %81 = vector.extract_strided_slice %3 {offsets = [0, 6, 0], sizes = [2, 1, 256], strides = [1, 1, 1]} : vector<2x8x256xf32> to vector<2x1x256xf32>
    %82 = vector.shape_cast %81 : vector<2x1x256xf32> to vector<2x256xf32>
    %83 = vector.extract_strided_slice %5 {offsets = [6, 0], sizes = [1, 256], strides = [1, 1]} : vector<8x256xf32> to vector<1x256xf32>
    %84 = vector.broadcast %83 : vector<1x256xf32> to vector<2x256xf32>
    %85 = arith.mulf %82, %84 : vector<2x256xf32>
    %86 = arith.addf %74, %85 : vector<2x256xf32>
    %87 = vector.extract_strided_slice %4 {offsets = [0, 6, 0], sizes = [2, 1, 256], strides = [1, 1, 1]} : vector<2x8x256xf32> to vector<2x1x256xf32>
    %88 = vector.shape_cast %87 : vector<2x1x256xf32> to vector<2x256xf32>
    %89 = vector.extract_strided_slice %6 {offsets = [6, 0], sizes = [1, 256], strides = [1, 1]} : vector<8x256xf32> to vector<1x256xf32>
    %90 = vector.broadcast %89 : vector<1x256xf32> to vector<2x256xf32>
    %91 = arith.mulf %88, %90 : vector<2x256xf32>
    %92 = arith.addf %80, %91 : vector<2x256xf32>
    %93 = vector.extract_strided_slice %3 {offsets = [0, 7, 0], sizes = [2, 1, 256], strides = [1, 1, 1]} : vector<2x8x256xf32> to vector<2x1x256xf32>
    %94 = vector.shape_cast %93 : vector<2x1x256xf32> to vector<2x256xf32>
    %95 = vector.extract_strided_slice %5 {offsets = [7, 0], sizes = [1, 256], strides = [1, 1]} : vector<8x256xf32> to vector<1x256xf32>
    %96 = vector.broadcast %95 : vector<1x256xf32> to vector<2x256xf32>
    %97 = arith.mulf %94, %96 : vector<2x256xf32>
    %98 = arith.addf %86, %97 : vector<2x256xf32>
    %99 = vector.extract_strided_slice %4 {offsets = [0, 7, 0], sizes = [2, 1, 256], strides = [1, 1, 1]} : vector<2x8x256xf32> to vector<2x1x256xf32>
    %100 = vector.shape_cast %99 : vector<2x1x256xf32> to vector<2x256xf32>
    %101 = vector.extract_strided_slice %6 {offsets = [7, 0], sizes = [1, 256], strides = [1, 1]} : vector<8x256xf32> to vector<1x256xf32>
    %102 = vector.broadcast %101 : vector<1x256xf32> to vector<2x256xf32>
    %103 = arith.mulf %100, %102 : vector<2x256xf32>
    %104 = arith.addf %92, %103 : vector<2x256xf32>
    %105 = vector.shape_cast %98 : vector<2x256xf32> to vector<1x2x256xf32>
    %c0_11 = arith.constant 0 : index
    %c0_12 = arith.constant 0 : index
    %c0_13 = arith.constant 0 : index
    %106 = vector.load %arg11[%c0_11, %c0_12, %c0_13] : memref<1x2x256xf32, #tpu.memory_space<vmem>>, vector<1x2x256xf32>
    tpu.vector_store %arg11[%c0_11, %c0_12, %c0_13], %105 {strides = array<i32>} : memref<1x2x256xf32, #tpu.memory_space<vmem>>, vector<1x2x256xf32>,
    %107 = vector.shape_cast %104 : vector<2x256xf32> to vector<1x2x256xf32>
    %c0_14 = arith.constant 0 : index
    %c0_15 = arith.constant 0 : index
    %c0_16 = arith.constant 0 : index
    %108 = vector.load %arg12[%c0_14, %c0_15, %c0_16] : memref<1x2x256xf32, #tpu.memory_space<vmem>>, vector<1x2x256xf32>
    tpu.vector_store %arg12[%c0_14, %c0_15, %c0_16], %107 {strides = array<i32>} : memref<1x2x256xf32, #tpu.memory_space<vmem>>, vector<1x2x256xf32>,
    return
  }
  func.func @transform_0(%arg0: i32, %arg1: i32) -> (i32, i32) {
    %c0_i32 = arith.constant 0 : i32
    %c0_i32_0 = arith.constant 0 : i32
    %c0_i32_1 = arith.constant 0 : i32
    return %c0_i32, %c0_i32_0 : i32, i32
  }
  func.func @transform_1(%arg0: i32, %arg1: i32) -> (i32, i32) {
    %c0_i32 = arith.constant 0 : i32
    %c0_i32_0 = arith.constant 0 : i32
    %c0_i32_1 = arith.constant 0 : i32
    return %c0_i32, %c0_i32_0 : i32, i32
  }
  func.func @transform_2(%arg0: i32, %arg1: i32) -> (i32, i32, i32) {
    %c0_i32 = arith.constant 0 : i32
    %c0_i32_0 = arith.constant 0 : i32
    %c0_i32_1 = arith.constant 0 : i32
    return %arg0, %c0_i32, %c0_i32_0 : i32, i32, i32
  }
  func.func @transform_3(%arg0: i32, %arg1: i32) -> (i32, i32, i32) {
    %c0_i32 = arith.constant 0 : i32
    %c0_i32_0 = arith.constant 0 : i32
    %c0_i32_1 = arith.constant 0 : i32
    return %arg0, %c0_i32, %c0_i32_0 : i32, i32, i32
  }
  func.func @transform_4(%arg0: i32, %arg1: i32) -> (i32, i32) {
    %c0_i32 = arith.constant 0 : i32
    %c0_i32_0 = arith.constant 0 : i32
    %c0_i32_1 = arith.constant 0 : i32
    return %c0_i32, %c0_i32_0 : i32, i32
  }
  func.func @transform_5(%arg0: i32, %arg1: i32) -> (i32, i32) {
    %c0_i32 = arith.constant 0 : i32
    %c0_i32_0 = arith.constant 0 : i32
    %c0_i32_1 = arith.constant 0 : i32
    return %c0_i32, %c0_i32_0 : i32, i32
  }
  func.func @transform_6(%arg0: i32, %arg1: i32) -> (i32, i32) {
    %c0_i32 = arith.constant 0 : i32
    %c0_i32_0 = arith.constant 0 : i32
    %c0_i32_1 = arith.constant 0 : i32
    return %c0_i32, %c0_i32_0 : i32, i32
  }
  func.func @transform_7(%arg0: i32, %arg1: i32) -> (i32, i32, i32) {
    %c0_i32 = arith.constant 0 : i32
    %c0_i32_0 = arith.constant 0 : i32
    %c0_i32_1 = arith.constant 0 : i32
    return %arg1, %c0_i32, %c0_i32_0 : i32, i32, i32
  }
  func.func @transform_8(%arg0: i32, %arg1: i32) -> (i32, i32, i32) {
    %c0_i32 = arith.constant 0 : i32
    %c0_i32_0 = arith.constant 0 : i32
    %c0_i32_1 = arith.constant 0 : i32
    return %arg1, %c0_i32, %c0_i32_0 : i32, i32, i32
  }
  func.func @transform_9(%arg0: i32, %arg1: i32) -> (i32, i32, i32) {
    %c0_i32 = arith.constant 0 : i32
    %c0_i32_0 = arith.constant 0 : i32
    return %arg0, %arg1, %c0_i32 : i32, i32, i32
  }
  func.func @transform_10(%arg0: i32, %arg1: i32) -> (i32, i32, i32) {
    %c0_i32 = arith.constant 0 : i32
    %c0_i32_0 = arith.constant 0 : i32
    return %arg0, %arg1, %c0_i32 : i32, i32, i32
  }
}

</mosaic_0001>

<bundles_post_ra>
// kernel: tpu_custom_call.1
= control target key start
LH: loop header
LB: loop body
LE: loop exit
PB: predicated region body
PF: predicated region fallthrough
CT: control target
= control target key end

     0   :  { %s3467_s0 = inlined_call_operand.hbm [shape: f32[8,256], index: 0, kind: input, shape index: {}]   ;;  %s3468_s1 = inlined_call_operand.hbm [shape: f32[8,256], index: 1, kind: input, shape index: {}]   ;;  %s3469_s2 = inlined_call_operand.hbm [shape: f32[4,1,256], index: 2, kind: input, shape index: {}]   ;;  %s3470_s3 = inlined_call_operand.hbm [shape: f32[4,1,256], index: 3, kind: input, shape index: {}]   ;;  %s3471_s4 = inlined_call_operand.hbm [shape: bf16[256,256], index: 4, kind: input, shape index: {}]   ;;  %s3472_s5 = inlined_call_operand.hbm [shape: bf16[256,256], index: 5, kind: input, shape index: {}]   ;;  %s3473_s6 = inlined_call_operand.hbm [shape: bf16[256,256], index: 6, kind: input, shape index: {}]   ;;  %s3474_s7 = inlined_call_operand.hbm [shape: f32[2,8,256], index: 7, kind: input, shape index: {}]   ;;  %s3475_s8 = inlined_call_operand.hbm [shape: f32[2,8,256], index: 8, kind: input, shape index: {}]   ;;  %s3476_s9 = inlined_call_operand.hbm [shape: f32[4,2,256], index: 9, kind: output, shape index: {0}]   ;;  %s3477_s10 = inlined_call_operand.hbm [shape: f32[4,2,256], index: 10, kind: output, shape index: {1}]  }
   0x1   :  { %3495 = sst [smem:[#allocation34_spill]] %s3467_s0 }
   0x2   :  { %3496 = sst [smem:[#allocation35_spill]] %s3468_s1 }
   0x3   :  { %3497 = sst [smem:[#allocation36_spill]] %s3469_s2 }
   0x4   :  { %3498 = sst [smem:[#allocation37_spill]] %s3472_s5 }
   0x5   :  { %3499 = sst [smem:[#allocation38_spill]] %s3474_s7 }
   0x6   :  { %16 = vsyncpa [#allocation5], 0 }
   0x7   :  { %17 = vsyncpa [#allocation8], 0 }
   0x8   :  { %18 = vsyncpa [#allocation13], 0 }
   0x9   :  { %19 = vsyncpa [#allocation16], 0 }
   0xa   :  { %20 = vsyncpa [#allocation6], 0 }
   0xb   :  { %22 = vsyncpa [#allocation6 + $0x1], 0 }
   0xc   :  { %23 = vsyncpa [#allocation20], 0 }
   0xd   :  { %25 = vsyncpa [#allocation20 + $0x1], 0  ;;  %s2928_s13 = smov 0   ;;  %s2930_s14 = smov 0  }
   0xe   :  { %s2932_s15 = smov 0   ;;  %s2934_s16 = smov 0  }
   0xf   :  { %s2936_s17 = smov 0   ;;  %s2938_s18 = smov 0  }
  0x10 LB: > { %3500 = sst [smem:[#allocation29_spill]] %s2835_s13  ;;  %s2959_s19 = sadd.s32 4294967295, %s2855_s18   ;;  %s2855_s18 = sphi %s2938_s18, %s31_s18   ;;  %s2851_s17 = sphi %s2936_s17, %s3547_s17   ;;  %s2847_s16 = sphi %s2934_s16, %s3546_s16   ;;  %s2843_s15 = sphi %s2932_s15, %s3542_s15   ;;  %s2839_s14 = sphi %s2930_s14, %s3545_s14   ;;  %s2835_s13 = sphi %s2928_s13, %s3544_s13  }
  0x11   : > { %3501 = sst [smem:[#allocation30_spill]] %s2843_s15  ;;  %p2060_p0 = scmp.ge.s32.totalorder %s2855_s18, 1 }
  0x12   : > { %p3478_p1 = scmp.eq.s32.totalorder %s2959_s19, 0  ;;  %p313_p2 = scmp.lt.s32.totalorder %s2855_s18, 5 }
  0x13   : > { %s2857_s21 = smov [#allocation4]   ;;  %s2858_s23 = smov [#allocation7]  }
  0x14   : > { %p2964_p3 = pnand %p2060_p0, %p313_p2  ;;  %s326_s22 = sshll.u32 %s2857_s21, 4  ;;  %s327_s22 = int_to_ptr.vmem [resolvable:$true] %s326_s22 }
  0x15   : > { %s337_s24 = sshll.u32 %s2858_s23, 4  ;;  %s2859_s26 = smov [#allocation12]   ;;  %s338_s24 = int_to_ptr.vmem [resolvable:$true] %s337_s24 }
  0x16   : > { %s3502_s20 = scalar_select %p2964_p3, 1, 0 }
  0x17   : > { %p2231_p4 = pneg %p2964_p3  ;;  %s360_s27 = sshll.u32 %s2859_s26, 4  ;;  %s361_s27 = int_to_ptr.vmem [resolvable:$true] %s360_s27 }
  0x18   : > { %s2498_s29 = scalar_lea.vmem %s327_s22, 256  ;;  %p2506_p10 = scmp.lt.s32.totalorder %s327_s22, %s327_s22 }
  0x19   : > { %p2972_p5 = pnand %p2231_p4, %p3478_p1  ;;  %p2499_p7 = scmp.ne.s32.totalorder %s327_s22, %s2498_s29 }
  0x1a   : > { %p2507_p11 = scmp.lt.s32.totalorder %s2498_s29, %s2498_s29 }
  0x1b   : > { %s3503_s25 = scalar_select %p2972_p5, 1, 0 }
  0x1c   : > { %p2978_p6 = pneg %p2972_p5  ;;  %p2508_p12 = por %p2507_p11, %p2506_p10 }
  0x1e   : > { %p2501_p8 = pnand %p2499_p7, %p2978_p6 }
  0x20   : > { %p2502_p9 = pneg %p2501_p8 }
  0x22   : > { %p2509_p13 = pnand %p2508_p12, %p2502_p9 }
  0x24   : > { %2512 = shalt.err (!%p2509_p13)
}
  0x25   : > { %s3505_s0 = sld [smem:[#allocation34_spill]]  ;;  %s2524_s12 = scalar_lea.vmem %s338_s24, 256 }
  0x26   : > { %p2525_p0 = scmp.ne.s32.totalorder %s338_s24, %s2524_s12  ;;  %p2532_p1 = scmp.lt.s32.totalorder %s338_s24, %s338_s24 }
  0x27   : > { %p2533_p7 = scmp.lt.s32.totalorder %s2524_s12, %s2524_s12 }
  0x28   : > { %p2527_p2 = pnand %p2525_p0, %p2978_p6 }
  0x29   : > { %p2534_p8 = por %p2533_p7, %p2532_p1 }
  0x2a   : > { %p2528_p4 = pneg %p2527_p2 }
  0x2b   : > { %2234 = dma.hbm_to_vmem [thread:$0]  (!%p2972_p5), %s3505_s0, 256, %s327_s22, [#allocation5]  }
  0x2c   : > { %p2535_p3 = pnand %p2534_p8, %p2528_p4 }
  0x2e   : > { %2538 = shalt.err (!%p2535_p3)
}
  0x2f   : > { %s3506_s1 = sld [smem:[#allocation35_spill]]  ;;  %s2550_s26 = scalar_lea.vmem %s361_s27, 4096 }
  0x30   : > { %p2551_p9 = scmp.ne.s32.totalorder %s361_s27, %s2550_s26  ;;  %p2558_p12 = scmp.lt.s32.totalorder %s361_s27, %s361_s27 }
  0x31   : > { %p2559_p13 = scmp.lt.s32.totalorder %s2550_s26, %s2550_s26 }
  0x32   : > { %p2553_p10 = pnand %p2551_p9, %p2978_p6 }
  0x33   : > { %p2560_p0 = por %p2559_p13, %p2558_p12 }
  0x34   : > { %p2554_p11 = pneg %p2553_p10 }
  0x35   : > { %2237 = dma.hbm_to_vmem [thread:$0]  (!%p2972_p5), %s3506_s1, 256, %s338_s24, [#allocation8]  }
  0x36   : > { %p2561_p2 = pnand %p2560_p0, %p2554_p11 }
  0x38   : > { %2564 = shalt.err (!%p2561_p2)
}
  0x39   : > { %s3480_s22 = smov 128   ;;  %s3484_s29 = smov 8  }
  0x3a   : > { %s3507_s5 = sld [smem:[#allocation37_spill]]  ;;  %s2862_s11 = smov [#allocation15]  }
  0x3b   : > { %s390_s12 = sshll.u32 %s2862_s11, 4  ;;  %s391_s12 = int_to_ptr.vmem [resolvable:$true] %s390_s12 }
  0x3c   : > { %s2576_s21 = scalar_lea.vmem %s391_s12, 512  ;;  %p2584_p7 = scmp.lt.s32.totalorder %s391_s12, %s391_s12 }
  0x3d   : > { %p2577_p1 = scmp.ne.s32.totalorder %s391_s12, %s2576_s21  ;;  %p2585_p8 = scmp.lt.s32.totalorder %s2576_s21, %s2576_s21 }
  0x3f   : > { %p2579_p3 = pnand %p2577_p1, %p2978_p6  ;;  %p2586_p9 = por %p2585_p8, %p2584_p7 }
  0x40   : > { %2243 = dma.hbm_to_vmem [thread:$0]  (!%p2972_p5), %s3507_s5, 4096, %s361_s27, [#allocation13], %s3480_s22, %s3480_s22, %s3484_s29  }
  0x41   : > { %p2580_p4 = pneg %p2579_p3 }
  0x43   : > { %p2587_p10 = pnand %p2586_p9, %p2580_p4 }
  0x45   : > { %2590 = shalt.err (!%p2587_p10)
}
  0x46   : > { %s3482_s23 = smov 256   ;;  %s3483_s27 = smov 16  }
  0x47   : > { %s3508_s7 = sld [smem:[#allocation38_spill]]  ;;  %s2059_s30 = sadd.s32 4294967294, %s2855_s18  }
  0x48   : > { %s43_s11 = sadd.s32 1, %s2851_s17  ;;  %s92_s21 = sadd.s32 1, %s2843_s15 }
  0x49   : > { %p45_p11 = scmp.ge.s32.totalorder %s43_s11, 4  ;;  %p99_p12 = scmp.ne.s32.totalorder %s2843_s15, %s2839_s14 }
  0x4a   : > { %p100_p13 = scmp.eq.s32.totalorder %s2855_s18, 0  ;;  %p105_p2 = scmp.ne.s32.totalorder %s2839_s14, %s2835_s13 }
  0x4b   : > { %s3549_s11 = smov (%p45_p11, %s43_s11), 0  ;;  %p272_p1 = scmp.eq.s32.totalorder %s2959_s19, 3 }
  0x4c   : > { %3509 = sst [smem:[#allocation31_spill]] %s3549_s11  ;;  %p3024_p0 = por %p100_p13, %p99_p12 }
  0x4d   : > { %2249 = dma.hbm_to_vmem [thread:$0]  (!%p2972_p5), %s3508_s7, 512, %s391_s12, [#allocation16], %s3482_s23, %s3482_s23, %s3483_s27  }
  0x4e   : > { %s89_s12 = ssub.s32 %s2851_s17, %s3549_s11  ;;  %p3511_p4 = scmp.eq.s32.totalorder %s2959_s19, 0 }
  0x4f   : > { %p90_p3 = scmp.eq.s32.totalorder %s89_s12, 0  ;;  %p3039_p8 = por %p272_p1, %p99_p12 }
  0x50   : > { %p3035_p7 = por %p3511_p4, %p105_p2  ;;  %p278_p9 = scmp.eq.s32.totalorder %s2059_s30, 3 }
  0x51   : > { %s3513_s24 = scalar_select %p3039_p8, 1, 0 }
  0x52   : > { %s3512_s26 = scalar_select %p3035_p7, 1, 0 }
  0x53   : > { %s3044_s23 = scalar_select %p90_p3, %s2843_s15, %s92_s21  }
  0x54   : > { %p3046_p10 = por %p278_p9, %p105_p2  ;;  %p2274_p11 = scmp.lt.s32.totalorder %s2855_s18, 4 }
  0x55   : > { %3514 = sst [smem:[#allocation32_spill]] %s3044_s23  ;;  %s421_s29 = sand.u32 1, %s2855_s18  }
  0x56   : > { %s3515_s27 = scalar_select %p3046_p10, 1, 0 }
  0x57   : > { %s423_s0 = sand.u32 1, %s2843_s15   ;;  %s2191_s1 = sshll.u32 %s2851_s17, 5 }
  0x58   : > { %3516 = sst [smem:[#allocation33_spill]] %s3515_s27  ;;  %s3053_s12 = sshll.u32 %s423_s0, 1 }
  0x59   : > { %s3517_s2 = sld [smem:[#allocation36_spill]]  ;;  %s425_s13 = scalar_lea.vmem [#allocation9], %s3053_s12 }
  0x5a   : > { %s433_s30 = sshll.u32 %s425_s13, 4  ;;  %p3064_p12 = pnand %p2274_p11, %p3024_p0  ;;  %s434_s30 = int_to_ptr.vmem [resolvable:$true] %s433_s30 }
  0x5b   : > { %s2865_s23 = smov [#allocation11]   ;;  %s3068_s15 = scalar_lea.sflag [#allocation5], %s421_s29 }
  0x5c   : > { %s347_s0 = sshll.u32 %s2865_s23, 4  ;;  %p3490_p13 = pneg %p3064_p12  ;;  %s348_s0 = int_to_ptr.vmem [resolvable:$true] %s347_s0 }
  0x5d   : > { %s2604_s27 = scalar_lea.vmem %s434_s30, 32  ;;  %s2866_s5 = smov [#allocation9]  }
  0x5e   : > { %p2605_p2 = scmp.ne.s32.totalorder %s434_s30, %s2604_s27  ;;  %s2609_s7 = sshll.u32 %s2866_s5, 4  ;;  %s2610_s7 = int_to_ptr.vmem [resolvable:$false] %s2609_s7 }
  0x5f   : > { %s431_s11 = scalar_lea.hbm %s3517_s2, %s2191_s1  ;;  %s2611_s13 = scalar_lea.vmem %s2610_s7, 64 }
  0x60   : > { %p2607_p1 = pnand %p2605_p2, %p3490_p13  ;;  %p2612_p0 = scmp.lt.s32.totalorder %s434_s30, %s2610_s7 }
  0x61   : > { %p2613_p4 = scmp.lt.s32.totalorder %s2611_s13, %s2604_s27 }
  0x62   : > { %p2608_p3 = pneg %p2607_p1 }
  0x63   : > { %p2614_p9 = por %p2613_p4, %p2612_p0 }
  0x65   : > { %p2615_p11 = pnand %p2614_p9, %p2608_p3 }
  0x67   : > { %2618 = shalt.err (!%p2615_p11)
}
  0x68   : > { %2256 = dma.hbm_to_vmem [thread:$0]  (!%p3064_p12), %s431_s11, 32, %s434_s30, %s3068_s15  }
  0x69   : > { %s2867_s22 = smov [#allocation14]   ;;  %s2630_s23 = scalar_lea.vmem %s348_s0, 4096 }
  0x6a   : > { %s373_s29 = sshll.u32 %s2867_s22, 4  ;;  %p2631_p2 = scmp.ne.s32.totalorder %s348_s0, %s2630_s23  ;;  %s374_s29 = int_to_ptr.vmem [resolvable:$true] %s373_s29 }
  0x6b   : > { %p2638_p10 = scmp.lt.s32.totalorder %s348_s0, %s348_s0  ;;  %p2639_p8 = scmp.lt.s32.totalorder %s2630_s23, %s2630_s23 }
  0x6c   : > { %p2633_p1 = pnand %p2631_p2, %p2978_p6 }
  0x6d   : > { %p2640_p7 = por %p2639_p8, %p2638_p10 }
  0x6e   : > { %p2634_p13 = pneg %p2633_p1 }
  0x70   : > { %p2641_p5 = pnand %p2640_p7, %p2634_p13 }
  0x72   : > { %2644 = shalt.err (!%p2641_p5)
}
  0x73   : > { %p3519_p3 = scmp.ne.s32.totalorder %s3503_s25, 0  ;;  %s3520_s27 = smov 8  }
  0x74   : > { %s3521_s5 = smov 128   ;;  %s2656_s30 = scalar_lea.vmem %s374_s29, 4096 }
  0x75   : > { %2240 = dma.hbm_to_vmem [thread:$0]  (!%p3519_p3), %s3471_s4, 4096, %s348_s0, [#allocation8], %s3521_s5, %s3521_s5, %s3520_s27  }
  0x76   : > { %p2657_p0 = scmp.ne.s32.totalorder %s374_s29, %s2656_s30  ;;  %p2664_p11 = scmp.lt.s32.totalorder %s374_s29, %s374_s29 }
  0x77   : > { %p2665_p8 = scmp.lt.s32.totalorder %s2656_s30, %s2656_s30 }
  0x78   : > { %p2659_p4 = pnand %p2657_p0, %p2978_p6 }
  0x79   : > { %p2666_p7 = por %p2665_p8, %p2664_p11 }
  0x7a   : > { %p2660_p9 = pneg %p2659_p4 }
  0x7c   : > { %p2667_p5 = pnand %p2666_p7, %p2660_p9 }
  0x7e   : > { %2670 = shalt.err (!%p2667_p5)
}
  0x7f   : > { %2246 = dma.hbm_to_vmem [thread:$0]  (!%p3519_p3), %s3473_s6, 4096, %s374_s29, [#allocation13], %s3521_s5, %s3521_s5, %s3520_s27  }
  0x80   : > { %s2868_s0 = smov [#allocation17]   ;;  %s450_s30 = scalar_lea.hbm %s3470_s3, %s2191_s1 }
  0x81   : > { %s407_s23 = sshll.u32 %s2868_s0, 4  ;;  %s408_s23 = int_to_ptr.vmem [resolvable:$true] %s407_s23 }
  0x82   : > { %s2682_s2 = scalar_lea.vmem %s408_s23, 512  ;;  %p2690_p1 = scmp.lt.s32.totalorder %s408_s23, %s408_s23 }
  0x83   : > { %p2683_p10 = scmp.ne.s32.totalorder %s408_s23, %s2682_s2  ;;  %p2691_p0 = scmp.lt.s32.totalorder %s2682_s2, %s2682_s2 }
  0x85   : > { %p2685_p13 = pnand %p2683_p10, %p2978_p6  ;;  %p2692_p4 = por %p2691_p0, %p2690_p1 }
  0x87   : > { %p2686_p2 = pneg %p2685_p13 }
  0x89   : > { %p2693_p9 = pnand %p2692_p4, %p2686_p2 }
  0x8b   : > { %2696 = shalt.err (!%p2693_p9)
}
  0x8c   : > { %s3522_s29 = smov 16   ;;  %s3523_s27 = smov 256  }
  0x8d   : > { %2252 = dma.hbm_to_vmem [thread:$0]  (!%p3519_p3), %s3475_s8, 512, %s408_s23, [#allocation16], %s3523_s27, %s3523_s27, %s3522_s29  }
  0x8e   : > { %s444_s1 = scalar_lea.vmem [#allocation10], %s3053_s12  ;;  %p3524_p11 = pneg %p3064_p12 }
  0x8f   : > { %s452_s28 = sshll.u32 %s444_s1, 4  ;;  %s2869_s2 = smov [#allocation10]   ;;  %s453_s28 = int_to_ptr.vmem [resolvable:$true] %s452_s28 }
  0x90   : > { %s2710_s22 = scalar_lea.vmem %s453_s28, 32  ;;  %s2715_s25 = sshll.u32 %s2869_s2, 4  ;;  %s2716_s25 = int_to_ptr.vmem [resolvable:$false] %s2715_s25 }
  0x91   : > { %p2711_p6 = scmp.ne.s32.totalorder %s453_s28, %s2710_s22  ;;  %s2717_s0 = scalar_lea.vmem %s2716_s25, 64 }
  0x92   : > { %p2718_p5 = scmp.lt.s32.totalorder %s453_s28, %s2716_s25  ;;  %p2719_p10 = scmp.lt.s32.totalorder %s2717_s0, %s2710_s22 }
  0x93   : > { %p2713_p8 = pnand %p2711_p6, %p3524_p11 }
  0x94   : > { %p2720_p13 = por %p2719_p10, %p2718_p5 }
  0x95   : > { %p2714_p7 = pneg %p2713_p8 }
  0x97   : > { %p2721_p2 = pnand %p2720_p13, %p2714_p7 }
  0x99   : > { %2724 = shalt.err (!%p2721_p2)
}
  0x9a   : > { %2259 = dma.hbm_to_vmem [thread:$0]  (!%p3064_p12), %s450_s30, 32, %s453_s28, %s3068_s15  }
  0x9b   : > { %p3525_p3 = scmp.ne.s32.totalorder %s3502_s20, 0 }
  0x9c   : > { %p3526_p1 = scmp.eq.s32.totalorder (!%p3525_p3), %s2959_s19, 0 }
  0x9d   : > { %461 = sbr.rel (%p3525_p3) target bundleno = 560 (0x230), region = 56 }
  0xa2   : > { %2802 = dma.done.wait (%p3526_p1), [#allocation5], 256   ;;  %p3527_p0 = pmov %p3526_p1 }
  0xa4   : > { %2804 = vsyncadd (%p3527_p0), [#allocation5], 4294967040  ;;  %p3528_p4 = pmov %p3527_p0 }
  0xa5   : > { %p3529_p9 = pmov %p3527_p0 }
  0xa6   : > { %2806 = dma.done.wait (%p3528_p4), [#allocation8], 256  }
  0xa7   : > { %2808 = vsyncadd (%p3529_p9), [#allocation8], 4294967040  ;;  %s471_s12 = sand.u32 1, %s2959_s19   ;;  %s3132_s15 = sand.u32 1, %s2839_s14  }
  0xa8   : > { %s2078_s20 = sshll.u32 %s3132_s15, 1  ;;  %s472_s21 = scalar_lea.sflag [#allocation5], %s471_s12 }
  0xa9   : > { %s3135_s23 = scalar_lea.vmem [#allocation9], %s2078_s20  ;;  %p3530_p12 = scmp.ne.s32.totalorder %s3512_s26, 0 }
  0xab   : > { %2810 = dma.done.wait (%p3530_p12), %s472_s21, 64  }
  0xac   : > { %2812 = vsyncadd (%p3530_p12), %s472_s21, 4294967232  ;;  %s3141_s7 = scalar_lea.vmem [#allocation10], %s2078_s20  ;;  %p3531_p6 = pmov %p3527_p0 }
  0xad   : > { %p3532_p11 = pmov %p3527_p0 }
  0xae   : > { %2814 = dma.done.wait (%p3531_p6), [#allocation8], 4096  }
  0xaf   : > { %2816 = vsyncadd (%p3532_p11), [#allocation8], 4294963200  ;;  %p3533_p8 = pmov %p3527_p0 }
  0xb0   : > { %p3534_p7 = pmov %p3527_p0 }
  0xb1   : > { %2818 = dma.done.wait (%p3533_p8), [#allocation13], 8192  }
  0xb2   : > { %2820 = vsyncadd (%p3534_p7), [#allocation13], 4294959104  ;;  %p3535_p5 = pmov %p3527_p0 }
  0xb3   : > { %p3536_p10 = pmov %p3527_p0 }
  0xb4   : > { %2822 = dma.done.wait (%p3535_p5), [#allocation16], 1024  }
  0xb5   : > { %2824 = vsyncadd (%p3536_p10), [#allocation16], 4294966272  ;;  %v2343_v0 = vld [vmem:[#allocation11 + $0x74] ss:$8 sps:$4 sm:$0xff]   ;;  %v2347_v2 = vld [vmem:[#allocation11 + $0x70] ss:$8 sps:$4 sm:$0xff]   ;;  %v564_v37 = vlaneseq }
  0xb6   : > { %v2345_v1 = vld [vmem:[#allocation12 + $0x74] ss:$8 sps:$4 sm:$0xff]   ;;  %797 = vmatprep.subr.bf16.mxu0 %v2343_v0  ;;  %v2348_v3 = vld [vmem:[#allocation12 + $0x70] ss:$8 sps:$4 sm:$0xff]   ;;  %v2349_v4 = vld [vmem:[#allocation11 + $0x64] ss:$8 sps:$4 sm:$0xff]  }
  0xb7   : > { %1030 = vmatprep.subr.bf16.mxu1 %v2345_v1  ;;  %798 = vmatpush1.bf16.msra.mxu0 %v2347_v2  ;;  %v2351_v5 = vld [vmem:[#allocation12 + $0x64] ss:$8 sps:$4 sm:$0xff]   ;;  %v2353_v6 = vld [vmem:[#allocation11 + $0x60] ss:$8 sps:$4 sm:$0xff]   ;;  %v2355_v8 = vld [vmem:[#allocation11 + $0x54] ss:$8 sps:$4 sm:$0xff]  }
  0xb8   : > { %1031 = vmatpush1.bf16.msra.mxu1 %v2348_v3  ;;  %799 = vmatprep.subr.bf16.mxu0 %v2349_v4  ;;  %v2354_v7 = vld [vmem:[#allocation12 + $0x60] ss:$8 sps:$4 sm:$0xff]   ;;  %v2357_v9 = vld [vmem:[#allocation12 + $0x54] ss:$8 sps:$4 sm:$0xff]   ;;  %v2359_v10 = vld [vmem:[#allocation11 + $0x50] ss:$8 sps:$4 sm:$0xff]  }
  0xb9   : > { %1032 = vmatprep.subr.bf16.mxu1 %v2351_v5  ;;  %v2360_v11 = vld [vmem:[#allocation12 + $0x50] ss:$8 sps:$4 sm:$0xff]   ;;  %v2361_v12 = vld [vmem:[#allocation11 + $0x44] ss:$8 sps:$4 sm:$0xff]   ;;  %v2365_v14 = vld [vmem:[#allocation11 + $0x40] ss:$8 sps:$4 sm:$0xff]  }
  0xba   : > { %v2363_v13 = vld [vmem:[#allocation12 + $0x44] ss:$8 sps:$4 sm:$0xff]   ;;  %v2366_v15 = vld [vmem:[#allocation12 + $0x40] ss:$8 sps:$4 sm:$0xff]   ;;  %v2367_v16 = vld [vmem:[#allocation11 + $0x34] ss:$8 sps:$4 sm:$0xff]  }
  0xbb   : > { %800 = vmatpush1.bf16.msra.mxu0 %v2353_v6  ;;  %v2369_v17 = vld [vmem:[#allocation12 + $0x34] ss:$8 sps:$4 sm:$0xff]   ;;  %v2371_v18 = vld [vmem:[#allocation11 + $0x30] ss:$8 sps:$4 sm:$0xff]   ;;  %v2373_v20 = vld [vmem:[#allocation11 + $0x24] ss:$8 sps:$4 sm:$0xff]  }
  0xbc   : > { %1033 = vmatpush1.bf16.msra.mxu1 %v2354_v7  ;;  %801 = vmatprep.subr.bf16.mxu0 %v2355_v8  ;;  %v2372_v19 = vld [vmem:[#allocation12 + $0x30] ss:$8 sps:$4 sm:$0xff]   ;;  %v2375_v21 = vld [vmem:[#allocation12 + $0x24] ss:$8 sps:$4 sm:$0xff]   ;;  %v2377_v22 = vld [vmem:[#allocation11 + $0x20] ss:$8 sps:$4 sm:$0xff]  }
  0xbd   : > { %1034 = vmatprep.subr.bf16.mxu1 %v2357_v9  ;;  %v2378_v23 = vld [vmem:[#allocation12 + $0x20] ss:$8 sps:$4 sm:$0xff]   ;;  %v2379_v24 = vld [vmem:[#allocation11 + $0x14] ss:$8 sps:$4 sm:$0xff]   ;;  %v2383_v26 = vld [vmem:[#allocation11 + $0x10] ss:$8 sps:$4 sm:$0xff]  }
  0xbe   : > { %v2381_v25 = vld [vmem:[#allocation12 + $0x14] ss:$8 sps:$4 sm:$0xff]   ;;  %v2384_v27 = vld [vmem:[#allocation12 + $0x10] ss:$8 sps:$4 sm:$0xff]   ;;  %v2385_v28 = vld [vmem:[#allocation11 + $0x4] ss:$8 sps:$4 sm:$0xff]  }
  0xbf   : > { %802 = vmatpush1.bf16.msra.mxu0 %v2359_v10  ;;  %v2387_v29 = vld [vmem:[#allocation12 + $0x4] ss:$8 sps:$4 sm:$0xff]   ;;  %v2389_v30 = vld [vmem:[#allocation11] ss:$8 sps:$4 sm:$0xff]   ;;  %v2391_v32 = vld [vmem:[#allocation11 + $0xf4] ss:$8 sps:$4 sm:$0xff]  }
  0xc0   : > { %1035 = vmatpush1.bf16.msra.mxu1 %v2360_v11  ;;  %803 = vmatprep.subr.bf16.mxu0 %v2361_v12  ;;  %v2390_v31 = vld [vmem:[#allocation12] ss:$8 sps:$4 sm:$0xff]   ;;  %v2393_v33 = vld [vmem:[#allocation12 + $0xf4] ss:$8 sps:$4 sm:$0xff]   ;;  %v2395_v34 = vld [vmem:[#allocation11 + $0xf0] ss:$8 sps:$4 sm:$0xff]  }
  0xc1   : > { %1036 = vmatprep.subr.bf16.mxu1 %v2363_v13  ;;  %v2396_v35 = vld [vmem:[#allocation12 + $0xf0] ss:$8 sps:$4 sm:$0xff]   ;;  %v2397_v36 = vld [vmem:[#allocation11 + $0xe4] ss:$8 sps:$4 sm:$0xff]   ;;  %v2401_v39 = vld [vmem:[#allocation11 + $0xe0] ss:$8 sps:$4 sm:$0xff]  }
  0xc2   : > { %v2399_v38 = vld [vmem:[#allocation12 + $0xe4] ss:$8 sps:$4 sm:$0xff]   ;;  %v2402_v40 = vld [vmem:[#allocation12 + $0xe0] ss:$8 sps:$4 sm:$0xff]   ;;  %v2403_v41 = vld [vmem:[#allocation11 + $0xd4] ss:$8 sps:$4 sm:$0xff]  }
  0xc3   : > { %804 = vmatpush1.bf16.msra.mxu0 %v2365_v14  ;;  %v3155_v42 = vshrl.u32 %v564_v37, 7  ;;  %v2405_v43 = vld [vmem:[#allocation12 + $0xd4] ss:$8 sps:$4 sm:$0xff]   ;;  %v2407_v44 = vld [vmem:[#allocation11 + $0xd0] ss:$8 sps:$4 sm:$0xff]   ;;  %v558_v49 = vld [vmem:[#allocation4 + $0x8] sm:$0xff] }
  0xc4   : > { %1037 = vmatpush1.bf16.msra.mxu1 %v2366_v15  ;;  %805 = vmatprep.subr.bf16.mxu0 %v2367_v16  ;;  %v2408_v45 = vld [vmem:[#allocation12 + $0xd0] ss:$8 sps:$4 sm:$0xff]   ;;  %v2409_v46 = vld [vmem:[#allocation11 + $0xc4] ss:$8 sps:$4 sm:$0xff]   ;;  %v562_v52 = vld [vmem:[%s3141_s7] sm:$0x3] }
  0xc5   : > { %1038 = vmatprep.subr.bf16.mxu1 %v2369_v17  ;;  %v3158_v47 = vsub.s32 1, %v3155_v42  ;;  %v2411_v48 = vld [vmem:[#allocation12 + $0xc4] ss:$8 sps:$4 sm:$0xff]   ;;  %v560_v50 = vld [vmem:[#allocation7 + $0x8] sm:$0xff]  ;;  %v561_v51 = vld [vmem:[%s3135_s23] sm:$0x3] }
  0xc6   : > { %v2413_v53 = vld [vmem:[#allocation11 + $0xc0] ss:$8 sps:$4 sm:$0xff]   ;;  %v2415_v56 = vld [vmem:[#allocation11 + $0xb4] ss:$8 sps:$4 sm:$0xff]   ;;  %v3165_v61 = vsub.s32 0, %v3155_v42  ;;  %s2085_s19 = sshll.u32 %s3132_s15, 2 }
  0xc7   : > { %806 = vmatpush1.bf16.msra.mxu0 %v2371_v18  ;;  %v2414_v54 = vld [vmem:[#allocation12 + $0xc0] ss:$8 sps:$4 sm:$0xff]   ;;  %v571_v55 = vrot.slane %v561_v51, %v3158_v47  ;;  %v2417_v57 = vld [vmem:[#allocation12 + $0xb4] ss:$8 sps:$4 sm:$0xff]   ;;  %v584_v58 = vrot.slane %v562_v52, %v3158_v47  ;;  %v2419_v0 = vld [vmem:[#allocation11 + $0xb0] ss:$8 sps:$4 sm:$0xff]  }
  0xc8   : > { %1039 = vmatpush1.bf16.msra.mxu1 %v2372_v19  ;;  %807 = vmatprep.subr.bf16.mxu0 %v2373_v20  ;;  %v2420_v1 = vld [vmem:[#allocation12 + $0xb0] ss:$8 sps:$4 sm:$0xff]   ;;  %v2421_v2 = vld [vmem:[#allocation11 + $0xa4] ss:$8 sps:$4 sm:$0xff]   ;;  %v2425_v6 = vld [vmem:[#allocation11 + $0xa0] ss:$8 sps:$4 sm:$0xff]   ;;  %v567_v8 = vrot.slane %v561_v51, %v3165_v61  ;;  %v580_v9 = vrot.slane %v562_v52, %v3165_v61 }
  0xc9   : > { %1040 = vmatprep.subr.bf16.mxu1 %v2375_v21  ;;  %v575_v59 = vmul.f32 %v571_v55, %v558_v49  ;;  %v594_v60 = vmul.f32 %v571_v55, %v560_v50  ;;  %v588_v62 = vmul.f32 %v584_v58, %v560_v50  ;;  %v592_v63 = vmul.f32 %v584_v58, %v558_v49  ;;  %v2423_v3 = vld [vmem:[#allocation12 + $0xa4] ss:$8 sps:$4 sm:$0xff]   ;;  %v2426_v7 = vld [vmem:[#allocation12 + $0xa0] ss:$8 sps:$4 sm:$0xff]   ;;  %v557_v12 = vld [vmem:[#allocation4] sm:$0xff]  ;;  %s2193_s26 = sshll.u32 %s2847_s16, 6 }
  0xca   : > { %v559_v13 = vld [vmem:[#allocation7] sm:$0xff]  ;;  %v2427_v14 = vld [vmem:[#allocation11 + $0x94] ss:$8 sps:$4 sm:$0xff]   ;;  %v574_v16 = vmul.f32 %v567_v8, %v557_v12  ;;  %v591_v18 = vmul.f32 %v580_v9, %v557_v12  ;;  %v2431_v20 = vld [vmem:[#allocation11 + $0x90] ss:$8 sps:$4 sm:$0xff]   ;;  %vm1775_vm0 = vcmask 1041409   ;;  %s3309_s5 = scalar_lea.hbm %s3476_s9, %s2193_s26 }
  0xcb   : > { %808 = vmatpush1.bf16.msra.mxu0 %v2377_v22  ;;  %v590_v4 = vsub.f32 %v575_v59, %v588_v62  ;;  %v596_v5 = vadd.f32 %v594_v60, %v592_v63  ;;  %v2429_v15 = vld [vmem:[#allocation12 + $0x94] ss:$8 sps:$4 sm:$0xff]   ;;  %v587_v17 = vmul.f32 %v580_v9, %v559_v13  ;;  %v593_v19 = vmul.f32 %v567_v8, %v559_v13  ;;  %v2432_v21 = vld [vmem:[#allocation12 + $0x90] ss:$8 sps:$4 sm:$0xff]   ;;  %v2433_v22 = vld [vmem:[#allocation11 + $0x84] ss:$8 sps:$4 sm:$0xff]  }
  0xcc   : > { %1041 = vmatpush1.bf16.msra.mxu1 %v2378_v23  ;;  %809 = vmatprep.subr.bf16.mxu0 %v2379_v24  ;;  %v2435_v23 = vld [vmem:[#allocation12 + $0x84] ss:$8 sps:$4 sm:$0xff]   ;;  %v2445_v37 = vld [vmem:[#allocation14 + $0x50] ss:$8 sps:$4 sm:$0xff]   ;;  %v2460_v49 = vld [vmem:[#allocation14] ss:$8 sps:$4 sm:$0xff]  }
  0xcd   : > { %1042 = vmatprep.subr.bf16.mxu1 %v2381_v25  ;;  %v598_v10 = vpack.c.bf16 %v590_v4, %v590_v4  ;;  %v600_v11 = vpack.c.bf16 %v596_v5, %v596_v5  ;;  %v3169_v24 = vsub.f32 %v574_v16, %v587_v17  ;;  %v3171_v25 = vadd.f32 %v593_v19, %v591_v18  ;;  %v2465_v50 = vld [vmem:[#allocation14 + $0xf4] ss:$8 sps:$4 sm:$0xff]   ;;  %v2463_v51 = vld [vmem:[#allocation14 + $0xf0] ss:$8 sps:$4 sm:$0xff]   ;;  %v2468_v52 = vld [vmem:[#allocation14 + $0xe4] ss:$8 sps:$4 sm:$0xff]  }
  0xce   : > { %v2469_v55 = vld [vmem:[#allocation14 + $0xd0] ss:$8 sps:$4 sm:$0xff]   ;;  %v2477_v58 = vld [vmem:[#allocation14 + $0xb4] ss:$8 sps:$4 sm:$0xff]   ;;  %v2480_v60 = vld [vmem:[#allocation14 + $0xa4] ss:$8 sps:$4 sm:$0xff]  }
  0xcf   : > { %810 = vmatpush1.bf16.msra.mxu0 %v2383_v26  ;;  %829 = vmatprep.mubr.bf16.mxu0 %v598_v10  ;;  %v2437_v26 = vld [vmem:[#allocation11 + $0x80] ss:$8 sps:$4 sm:$0xff]   ;;  %v2475_v59 = vld [vmem:[#allocation14 + $0xb0] ss:$8 sps:$4 sm:$0xff]   ;;  %v2483_v63 = vld [vmem:[#allocation14 + $0x94] ss:$8 sps:$4 sm:$0xff]  }
  0xd0   : > { %1043 = vmatpush1.bf16.msra.mxu1 %v2384_v27  ;;  %811 = vmatprep.subr.bf16.mxu0 %v2385_v28  ;;  %v2438_v27 = vld [vmem:[#allocation12 + $0x80] ss:$8 sps:$4 sm:$0xff]   ;;  %v602_v28 = vadd.f32 %v596_v5, %v590_v4  ;;  %v3180_v5 = vsub.s32 2, %v3155_v42  ;;  %v3187_v8 = vsub.s32 3, %v3155_v42  ;;  %v3190_v9 = vsub.s32 4, %v3155_v42  ;;  %s543_s11 = scalar_lea.vmem [#allocation18], %s2085_s19 }
  0xd1   : > { %1044 = vmatprep.subr.bf16.mxu1 %v2387_v29  ;;  %1062 = vmatprep.mubr.bf16.mxu1 %v600_v11  ;;  %v2441_v29 = vld [vmem:[#allocation14 + $0x74] ss:$8 sps:$4 sm:$0xff]   ;;  %v2478_v62 = vld [vmem:[#allocation14 + $0xa0] ss:$8 sps:$4 sm:$0xff]   ;;  %v3193_v10 = vsub.s32 5, %v3155_v42  ;;  %v3196_v11 = vsub.s32 6, %v3155_v42 }
  0xd2   : > { %v3202_v13 = vld [vmem:[#allocation15] sm:$0xff]  ;;  %v3209_v16 = vsub.s32 7, %v3155_v42  ;;  %v2870_v17 = vmov 1983009808   ;;  %vm1777_vm1 = vcmask 1043459   ;;  %vm1779_vm2 = vcmask 1045509  }
  0xd3   : > { %812 = vmatpush1.bf16.msra.mxu0 %v2389_v30  ;;  %v597_v30 = vpack.c.bf16 %v3169_v24, %v3169_v24  ;;  %v3211_v18 = vunpack.c.l.s4 %v2870_v17  ;;  %s1836_s30 = sshll.u32 %s543_s11, 4  ;;  %vm1781_vm3 = vcmask 1047559   ;;  %s1815_s13 = scalar_lea.sflag [#allocation6], %s3132_s15  ;;  %s1837_s30 = int_to_ptr.vmem [resolvable:$true] %s1836_s30 }
  0xd4   : > { %1045 = vmatpush1.bf16.msra.mxu1 %v2390_v31  ;;  %813 = vmatprep.subr.bf16.mxu0 %v2391_v32  ;;  %v599_v31 = vpack.c.bf16 %v3171_v25, %v3171_v25  ;;  %v2439_v32 = vld [vmem:[#allocation14 + $0x70] ss:$8 sps:$4 sm:$0xff]   ;;  %s2725_s1 = scalar_lea.vmem %s1837_s30, 64  ;;  %p3537_p2 = scmp.ne.s32.totalorder %s3513_s24, 0 }
  0xd5   : > { %1046 = vmatprep.subr.bf16.mxu1 %v2393_v33  ;;  %v604_v33 = vpack.c.bf16 %v602_v28, %v602_v28  ;;  %p2726_p13 = scmp.ne.s32.totalorder %s1837_s30, %s2725_s1  ;;  %s2871_s28 = smov [#allocation18]  }
  0xd6   : > { %s2729_s22 = sshll.u32 %s2871_s28, 4  ;;  %s2730_s22 = int_to_ptr.vmem [resolvable:$false] %s2729_s22 }
  0xd7   : > { %814 = vmatpush2.bf16.msra.mxu0 %v2395_v34  ;;  %v2444_v34 = vld [vmem:[#allocation14 + $0x64] ss:$8 sps:$4 sm:$0xff]   ;;  %p2727_p3 = pnand %p2726_p13, %p3537_p2  ;;  %s2731_s2 = scalar_lea.vmem %s2730_s22, 128 }
  0xd8   : > { %1047 = vmatpush2.bf16.msra.mxu1 %v2396_v35  ;;  %815 = vmatprep.subr.bf16.mxu0 %v2397_v36  ;;  %v2442_v35 = vld [vmem:[#allocation14 + $0x60] ss:$8 sps:$4 sm:$0xff]   ;;  %v2447_v36 = vld [vmem:[#allocation14 + $0x54] ss:$8 sps:$4 sm:$0xff]   ;;  %p2732_p0 = scmp.lt.s32.totalorder %s1837_s30, %s2730_s22  ;;  %p2733_p4 = scmp.lt.s32.totalorder %s2731_s2, %s2725_s1 }
  0xd9   : > { %1048 = vmatprep.subr.bf16.mxu1 %v2399_v38  ;;  %v2450_v38 = vld [vmem:[#allocation14 + $0x44] ss:$8 sps:$4 sm:$0xff]   ;;  %p2728_p1 = pneg %p2727_p3 }
  0xda   : > { %p2734_p9 = por %p2733_p4, %p2732_p0 }
  0xdb   : > { %816 = vmatpush2.bf16.msra.mxu0 %v2401_v39  ;;  %v2448_v39 = vld [vmem:[#allocation14 + $0x40] ss:$8 sps:$4 sm:$0xff]  }
  0xdc   : > { %1049 = vmatpush2.bf16.msra.mxu1 %v2402_v40  ;;  %817 = vmatprep.subr.bf16.mxu0 %v2403_v41  ;;  %v2453_v40 = vld [vmem:[#allocation14 + $0x34] ss:$8 sps:$4 sm:$0xff]   ;;  %v2451_v41 = vld [vmem:[#allocation14 + $0x30] ss:$8 sps:$4 sm:$0xff]   ;;  %p2735_p12 = pnand %p2734_p9, %p2728_p1 }
  0xdd   : > { %1050 = vmatprep.subr.bf16.mxu1 %v2405_v43  ;;  %v2456_v43 = vld [vmem:[#allocation14 + $0x24] ss:$8 sps:$4 sm:$0xff]  }
  0xdf   : > { %818 = vmatpush2.bf16.msra.mxu0 %v2407_v44  ;;  %v2454_v44 = vld [vmem:[#allocation14 + $0x20] ss:$8 sps:$4 sm:$0xff]  }
  0xe0   : > { %1051 = vmatpush2.bf16.msra.mxu1 %v2408_v45  ;;  %819 = vmatprep.subr.bf16.mxu0 %v2409_v46  ;;  %v2459_v45 = vld [vmem:[#allocation14 + $0x14] ss:$8 sps:$4 sm:$0xff]   ;;  %v2457_v46 = vld [vmem:[#allocation14 + $0x10] ss:$8 sps:$4 sm:$0xff]  }
  0xe1   : > { %1052 = vmatprep.subr.bf16.mxu1 %v2411_v48  ;;  %v2462_v48 = vld [vmem:[#allocation14 + $0x4] ss:$8 sps:$4 sm:$0xff]  }
  0xe3   : > { %820 = vmatpush2.bf16.msra.mxu0 %v2413_v53  ;;  %v2466_v53 = vld [vmem:[#allocation14 + $0xe0] ss:$8 sps:$4 sm:$0xff]  }
  0xe4   : > { %1053 = vmatpush2.bf16.msra.mxu1 %v2414_v54  ;;  %821 = vmatprep.subr.bf16.mxu0 %v2415_v56  ;;  %v2471_v54 = vld [vmem:[#allocation14 + $0xd4] ss:$8 sps:$4 sm:$0xff]   ;;  %v2474_v56 = vld [vmem:[#allocation14 + $0xc4] ss:$8 sps:$4 sm:$0xff]  }
  0xe5   : > { %1054 = vmatprep.subr.bf16.mxu1 %v2417_v57  ;;  %v2472_v57 = vld [vmem:[#allocation14 + $0xc0] ss:$8 sps:$4 sm:$0xff]  }
  0xe7   : > { %822 = vmatpush2.bf16.msra.mxu0 %v2419_v0  ;;  %v2481_v0 = vld [vmem:[#allocation14 + $0x90] ss:$8 sps:$4 sm:$0xff]  }
  0xe8   : > { %1055 = vmatpush2.bf16.msra.mxu1 %v2420_v1  ;;  %823 = vmatprep.subr.bf16.mxu0 %v2421_v2  ;;  %v2486_v1 = vld [vmem:[#allocation14 + $0x84] ss:$8 sps:$4 sm:$0xff]   ;;  %v601_v2 = vadd.f32 %v3171_v25, %v3169_v24 }
  0xe9   : > { %1056 = vmatprep.subr.bf16.mxu1 %v2423_v3  ;;  %v2484_v3 = vld [vmem:[#allocation14 + $0x80] ss:$8 sps:$4 sm:$0xff]  }
  0xea   : > { %v603_v4 = vpack.c.bf16 %v601_v2, %v601_v2  ;;  %v3225_v24 = vld [vmem:[#allocation15 + $0x8] sm:$0xff] }
  0xeb   : > { %824 = vmatpush2.bf16.msra.mxu0 %v2425_v6 }
  0xec   : > { %1057 = vmatpush2.bf16.msra.mxu1 %v2426_v7  ;;  %825 = vmatprep.subr.bf16.mxu0 %v2427_v14 }
  0xed   : > { %1058 = vmatprep.subr.bf16.mxu1 %v2429_v15 }
  0xef   : > { %826 = vmatpush2.bf16.msra.mxu0 %v2431_v20 }
  0xf0   : > { %1059 = vmatpush2.bf16.msra.mxu1 %v2432_v21  ;;  %827 = vmatprep.subr.bf16.mxu0 %v2433_v22 }
  0xf1   : > { %1060 = vmatprep.subr.bf16.mxu1 %v2435_v23  ;;  %v3223_v23 = vld [vmem:[#allocation15 + $0x10] sm:$0xff] }
  0xf3   : > { %828 = vmatpush2.bf16.msra.mxu0 %v2437_v26 }
  0xf4   : > { %1061 = vmatpush2.bf16.msra.mxu1 %v2438_v27  ;;  %1263 = vmatprep.subr.bf16.mxu0 %v2441_v29  ;;  %v3227_v27 = vld [vmem:[#allocation15 + $0x18] sm:$0xff] }
  0xf6   : > { %830 = vmatmul.mubr.bf16.vlgmr.msra.gmra.mxu0 %v597_v30 }
  0xf7   : > { %1063 = vmatmul.mubr.bf16.vlgmr.msra.gmra.mxu1 %v599_v31  ;;  %1264 = vmatpush1.bf16.msra.mxu0 %v2439_v32 }
  0xf8   : > { %1295 = vmatprep.mubr.bf16.mxu0 %v604_v33  ;;  %1265 = vmatprep.subr.bf16.mxu0 %v2444_v34 }
  0xfb   : > { %1266 = vmatpush1.bf16.msra.mxu0 %v2442_v35 }
  0xfc   : > { %1267 = vmatprep.subr.bf16.mxu0 %v2447_v36 }
  0xff   : > { %1268 = vmatpush1.bf16.msra.mxu0 %v2445_v37 }
 0x100   : > { %1269 = vmatprep.subr.bf16.mxu0 %v2450_v38 }
 0x103   : > { %1270 = vmatpush1.bf16.msra.mxu0 %v2448_v39 }
 0x104   : > { %1271 = vmatprep.subr.bf16.mxu0 %v2453_v40 }
 0x107   : > { %1272 = vmatpush1.bf16.msra.mxu0 %v2451_v41 }
 0x108   : > { %1273 = vmatprep.subr.bf16.mxu0 %v2456_v43 }
 0x10b   : > { %1274 = vmatpush1.bf16.msra.mxu0 %v2454_v44 }
 0x10c   : > { %1275 = vmatprep.subr.bf16.mxu0 %v2459_v45 }
 0x10f   : > { %1276 = vmatpush1.bf16.msra.mxu0 %v2457_v46 }
 0x110   : > { %1277 = vmatprep.subr.bf16.mxu0 %v2462_v48 }
 0x113   : > { %1278 = vmatpush1.bf16.msra.mxu0 %v2460_v49 }
 0x114   : > { %1279 = vmatprep.subr.bf16.mxu0 %v2465_v50 }
 0x117   : > { %1280 = vmatpush2.bf16.msra.mxu0 %v2463_v51 }
 0x118   : > { %1281 = vmatprep.subr.bf16.mxu0 %v2468_v52 }
 0x11b   : > { %1282 = vmatpush2.bf16.msra.mxu0 %v2466_v53 }
 0x11c   : > { %1283 = vmatprep.subr.bf16.mxu0 %v2471_v54 }
 0x11f   : > { %1284 = vmatpush2.bf16.msra.mxu0 %v2469_v55 }
 0x120   : > { %1285 = vmatprep.subr.bf16.mxu0 %v2474_v56 }
 0x123   : > { %1286 = vmatpush2.bf16.msra.mxu0 %v2472_v57 }
 0x124   : > { %1287 = vmatprep.subr.bf16.mxu0 %v2477_v58 }
 0x127   : > { %1288 = vmatpush2.bf16.msra.mxu0 %v2475_v59 }
 0x128   : > { %1289 = vmatprep.subr.bf16.mxu0 %v2480_v60 }
 0x12b   : > { %1290 = vmatpush2.bf16.msra.mxu0 %v2478_v62 }
 0x12c   : > { %1291 = vmatprep.subr.bf16.mxu0 %v2483_v63 }
 0x12f   : > { %1292 = vmatpush2.bf16.msra.mxu0 %v2481_v0 }
 0x130   : > { %1293 = vmatprep.subr.bf16.mxu0 %v2486_v1 }
 0x133   : > { %1294 = vmatpush2.bf16.msra.mxu0 %v2484_v3 }
 0x136   : > { %1296 = vmatmul.mubr.bf16.vlgmr.msra.gmra.mxu0 %v603_v4 }
 0x1b6   : > { %v3182_v6 = vpop.f32.mrf.mxu0 }
 0x1b7   : > { %v3184_v7 = vpop.f32.mrf.mxu1 }
 0x1b8   : > { %v3200_v12 = vsub.f32 %v3182_v6, %v3184_v7  ;;  %v3204_v14 = vpop.f32.mrf.mxu0 }
 0x1b9   : > { %v3206_v15 = vpop.f32.mrf.mxu1 }
 0x1ba   : > { %v1329_v19 = vrot.slane %v3200_v12, %v3165_v61  ;;  %v1361_v20 = vrot.slane %v3200_v12, %v3158_v47  ;;  %v1417_v21 = vrot.slane %v3200_v12, %v3180_v5  ;;  %v3221_v22 = vsub.f32 %v3204_v14, %v3206_v15  ;;  %v835_v25 = vpop.f32.mrf.mxu0 }
 0x1bb   : > { %v1068_v26 = vpop.f32.mrf.mxu1  ;;  %v1473_v28 = vrot.slane %v3200_v12, %v3187_v8  ;;  %v1529_v29 = vrot.slane %v3200_v12, %v3190_v9  ;;  %v1585_v30 = vrot.slane %v3200_v12, %v3193_v10  ;;  %v3237_v31 = vrot.slane %v3200_v12, %v3196_v11 }
 0x1bc   : > { %v1334_v32 = vmul.f32 %v1329_v19, %v3202_v13  ;;  %v1366_v33 = vmul.f32 %v1361_v20, %v3202_v13  ;;  %v1333_v34 = vrot.slane %v3221_v22, %v3165_v61  ;;  %v1365_v35 = vrot.slane %v3221_v22, %v3158_v47  ;;  %v836_v37 = vpop.f32.mrf.mxu0 }
 0x1bd   : > { %v1421_v36 = vrot.slane %v3221_v22, %v3180_v5  ;;  %v1069_v38 = vpop.f32.mrf.mxu1  ;;  %v1336_v39 = vmul.f32 %v1329_v19, %v3223_v23  ;;  %v1368_v40 = vmul.f32 %v1361_v20, %v3223_v23  ;;  %v1422_v41 = vmul.f32 %v1417_v21, %v3202_v13 }
 0x1be   : > { %v1374_v43 = vrot.slane %v1366_v33, 1  ;;  %v1335_v44 = vmul.f32 %v1333_v34, %v3225_v24  ;;  %v1367_v45 = vmul.f32 %v1365_v35, %v3225_v24  ;;  %v1337_v46 = vmul.f32 %v1333_v34, %v3227_v27 }
 0x1bf   : > { %v1369_v48 = vmul.f32 %v1365_v35, %v3227_v27  ;;  %v1376_v49 = vrot.slane %v1368_v40, 1  ;;  %v1423_v50 = vmul.f32 %v1421_v36, %v3225_v24  ;;  %v1424_v51 = vmul.f32 %v1417_v21, %v3223_v23 }
 0x1c0   : > { %v1375_v52 = vrot.slane %v1367_v45, 1  ;;  %v1382_v53 = vadd.f32 %v1374_v43, %v1334_v32  ;;  %v1425_v54 = vmul.f32 %v1421_v36, %v3227_v27  ;;  %v1430_v55 = vrot.slane %v1422_v41, 2 }
 0x1c1   : > { %v1377_v56 = vrot.slane %v1369_v48, 1  ;;  %v1384_v57 = vadd.f32 %v1376_v49, %v1336_v39  ;;  %v1431_v58 = vrot.slane %v1423_v50, 2  ;;  %v1432_v59 = vrot.slane %v1424_v51, 2 }
 0x1c2   : > { %v1383_v60 = vadd.f32 %v1375_v52, %v1335_v44  ;;  %v1433_v62 = vrot.slane %v1425_v54, 2  ;;  %v1438_v63 = vadd.f32 %v1430_v55, %v1382_v53  ;;  %v1477_v0 = vrot.slane %v3221_v22, %v3187_v8 }
 0x1c3   : > { %v1385_v1 = vadd.f32 %v1377_v56, %v1337_v46  ;;  %v1440_v2 = vadd.f32 %v1432_v59, %v1384_v57  ;;  %v1478_v3 = vmul.f32 %v1473_v28, %v3202_v13  ;;  %v1480_v4 = vmul.f32 %v1473_v28, %v3223_v23 }
 0x1c4   : > { %v1439_v17 = vadd.f32 %v1431_v58, %v1383_v60  ;;  %v1479_v19 = vmul.f32 %v1477_v0, %v3225_v24  ;;  %v1481_v20 = vmul.f32 %v1477_v0, %v3227_v27  ;;  %v1533_v21 = vrot.slane %v3221_v22, %v3190_v9 }
 0x1c5   : > { %v1441_v25 = vadd.f32 %v1433_v62, %v1385_v1  ;;  %v1486_v26 = vrot.slane %v1478_v3, 3  ;;  %v1488_v32 = vrot.slane %v1480_v4, 3  ;;  %v1534_v33 = vmul.f32 %v1529_v29, %v3202_v13 }
 0x1c6   : > { %v1487_v34 = vrot.slane %v1479_v19, 3  ;;  %v1489_v35 = vrot.slane %v1481_v20, 3  ;;  %v1535_v36 = vmul.f32 %v1533_v21, %v3225_v24  ;;  %v1536_v37 = vmul.f32 %v1529_v29, %v3223_v23 }
 0x1c7   : > { %v1494_v28 = vadd.f32 %v1486_v26, %v1438_v63  ;;  %v1496_v38 = vadd.f32 %v1488_v32, %v1440_v2  ;;  %v1537_v39 = vmul.f32 %v1533_v21, %v3227_v27  ;;  %v1542_v40 = vrot.slane %v1534_v33, 4 }
 0x1c8   : > { %v1495_v41 = vadd.f32 %v1487_v34, %v1439_v17  ;;  %v1497_v43 = vadd.f32 %v1489_v35, %v1441_v25  ;;  %v1543_v44 = vrot.slane %v1535_v36, 4  ;;  %v1544_v45 = vrot.slane %v1536_v37, 4 }
 0x1c9   : > { %v1545_v46 = vrot.slane %v1537_v39, 4  ;;  %v1550_v48 = vadd.f32 %v1542_v40, %v1494_v28  ;;  %v1589_v49 = vrot.slane %v3221_v22, %v3193_v10  ;;  %v1590_v50 = vmul.f32 %v1585_v30, %v3202_v13 }
 0x1ca   : > { %v1551_v51 = vadd.f32 %v1543_v44, %v1495_v41  ;;  %v1552_v52 = vadd.f32 %v1544_v45, %v1496_v38  ;;  %v1592_v29 = vmul.f32 %v1585_v30, %v3223_v23  ;;  %v1645_v53 = vrot.slane %v3221_v22, %v3196_v11 }
 0x1cb   : > { %v1553_v54 = vadd.f32 %v1545_v46, %v1497_v43  ;;  %v1591_v55 = vmul.f32 %v1589_v49, %v3225_v24  ;;  %v1593_v56 = vmul.f32 %v1589_v49, %v3227_v27  ;;  %v1598_v57 = vrot.slane %v1590_v50, 5 }
 0x1cc   : > { %v1600_v58 = vrot.slane %v1592_v29, 5  ;;  %v1646_v59 = vmul.f32 %v3237_v31, %v3202_v13  ;;  %v1647_v60 = vmul.f32 %v1645_v53, %v3225_v24  ;;  %v1648_v62 = vmul.f32 %v3237_v31, %v3223_v23 }
 0x1cd   : > { %v1599_v63 = vrot.slane %v1591_v55, 5  ;;  %v1601_v30 = vrot.slane %v1593_v56, 5  ;;  %v1606_v0 = vadd.f32 %v1598_v57, %v1550_v48  ;;  %v1649_v1 = vmul.f32 %v1645_v53, %v3227_v27 }
 0x1ce   : > { %v1608_v2 = vadd.f32 %v1600_v58, %v1552_v52  ;;  %v1654_v3 = vrot.slane %v1646_v59, 6  ;;  %v1656_v19 = vrot.slane %v1648_v62, 6  ;;  %v1697_v20 = vrot.slane %v3200_v12, %v3209_v16 }
 0x1cf   : > { %v1607_v4 = vadd.f32 %v1599_v63, %v1551_v51  ;;  %v1609_v17 = vadd.f32 %v1601_v30, %v1553_v54  ;;  %v1655_v21 = vrot.slane %v1647_v60, 6  ;;  %v1657_v25 = vrot.slane %v1649_v1, 6 }
 0x1d0   : > { %v1701_v26 = vrot.slane %v3221_v22, %v3209_v16  ;;  %v1757_v31 = vunpack.c.0.s8 %v3211_v18  ;;  %v1662_v32 = vadd.f32 %v1654_v3, %v1606_v0  ;;  %v1664_v33 = vadd.f32 %v1656_v19, %v1608_v2 }
 0x1d1   : > { %v1702_v34 = vmul.f32 %v1697_v20, %v3202_v13  ;;  %v1704_v35 = vmul.f32 %v1697_v20, %v3223_v23  ;;  %v1663_v36 = vadd.f32 %v1655_v21, %v1607_v4  ;;  %v1665_v37 = vadd.f32 %v1657_v25, %v1609_v17 }
 0x1d2   : > { %v1703_v28 = vmul.f32 %v1701_v26, %v3225_v24  ;;  %v1705_v12 = vmul.f32 %v1701_v26, %v3227_v27  ;;  %v3293_v18 = vsub.s32 %v1757_v31, %v3155_v42 }
 0x1d3   : > { %v1710_v38 = vrot.slane %v1702_v34, 7  ;;  %v1712_v40 = vrot.slane %v1704_v35, 7 }
 0x1d4   : > { %v1711_v39 = vrot.slane %v1703_v28, 7  ;;  %v1713_v22 = vrot.slane %v1705_v12, 7 }
 0x1d5   : > { %v1718_v41 = vadd.f32 %v1710_v38, %v1662_v32  ;;  %v1720_v43 = vadd.f32 %v1712_v40, %v1664_v33 }
 0x1d6   : > { %v1719_v13 = vadd.f32 %v1711_v39, %v1663_v36  ;;  %v1721_v23 = vadd.f32 %v1713_v22, %v1665_v37 }
 0x1d8   : > { %v1754_v44 = vcombine.low %v1718_v41, %v1719_v13  ;;  %v1762_v45 = vcombine.low %v1720_v43, %v1721_v23 }
 0x1da   : > { %v1769_v24 = vrot.slane %v1762_v45, %v3293_v18  ;;  %v1761_v27 = vrot.slane %v1754_v44, %v3293_v18 }
 0x1dc   : > { %v1774_v46 = vrot.slane %v1769_v24, 7 }
 0x1de   : > { %v1776_v42 = vsel %vm1775_vm0, %v1774_v46, %v1761_v27 }
 0x1df   : > { %v1778_v48 = vsel %vm1777_vm1, %v1774_v46, %v1776_v42 }
 0x1e0   : > { %v1780_v49 = vsel %vm1779_vm2, %v1774_v46, %v1778_v48 }
 0x1e1   : > { %v1782_v50 = vsel %vm1781_vm3, %v1774_v46, %v1780_v49 }
 0x1e2   : > { %1784 = vst [vmem:[%s543_s11] sm:$0xf] %v1782_v50 }
 0x1e3   : > { %2738 = shalt.err (!%p2735_p12)
}
 0x1e4   : > { %s2739_s25 = scalar_lea.hbm %s3309_s5, 64  ;;  %s2743_s20 = scalar_lea.hbm %s3476_s9, 256 }
 0x1e5   : > { %p2740_p6 = scmp.ne.s32.totalorder %s3309_s5, %s2739_s25  ;;  %p2744_p7 = scmp.lt.s32.totalorder %s3309_s5, %s3476_s9 }
 0x1e6   : > { %p2745_p5 = scmp.lt.s32.totalorder %s2743_s20, %s2739_s25 }
 0x1e7   : > { %p2741_p11 = pnand %p2740_p6, %p3537_p2 }
 0x1e8   : > { %p2746_p10 = por %p2745_p5, %p2744_p7 }
 0x1e9   : > { %p2742_p8 = pneg %p2741_p11 }
 0x1eb   : > { %p2747_p13 = pnand %p2746_p10, %p2742_p8 }
 0x1ed   : > { %2750 = shalt.err (!%p2747_p13)
}
 0x1ee   : > { %2227 = dma.vmem_to_hbm [thread:$0]  (%p3537_p2), %s1837_s30, 64, %s3309_s5, %s1815_s13   ;;  %v3334_v55 = vld [vmem:[#allocation17] sm:$0xff]  ;;  %v3345_v60 = vld [vmem:[#allocation17 + $0x10] sm:$0xff]  ;;  %v3349_v62 = vld [vmem:[#allocation17 + $0x18] sm:$0xff] }
 0x1ef   : > { %s550_s7 = scalar_lea.vmem [#allocation19], %s2085_s19  ;;  %s3425_s27 = scalar_lea.hbm %s3477_s10, %s2193_s26 }
 0x1f0   : > { %s1852_s11 = sshll.u32 %s550_s7, 4  ;;  %s1820_s5 = scalar_lea.sflag [#allocation20], %s3132_s15  ;;  %s1853_s11 = int_to_ptr.vmem [resolvable:$true] %s1852_s11 }
 0x1f1   : > { %s2751_s13 = scalar_lea.vmem %s1853_s11, 64  ;;  %s2872_s19 = smov [#allocation19]  }
 0x1f2   : > { %p2752_p3 = scmp.ne.s32.totalorder %s1853_s11, %s2751_s13  ;;  %s2755_s1 = sshll.u32 %s2872_s19, 4  ;;  %s2756_s1 = int_to_ptr.vmem [resolvable:$false] %s2755_s1 }
 0x1f3   : > { %s2757_s28 = scalar_lea.vmem %s2756_s1, 128  ;;  %p2758_p4 = scmp.lt.s32.totalorder %s1853_s11, %s2756_s1 }
 0x1f4   : > { %p2753_p1 = pnand %p2752_p3, %p3537_p2  ;;  %p2759_p9 = scmp.lt.s32.totalorder %s2757_s28, %s2751_s13 }
 0x1f6   : > { %v1297_v51 = vpop.f32.mrf.mxu0  ;;  %p2754_p0 = pneg %p2753_p1  ;;  %p2760_p12 = por %p2759_p9, %p2758_p4 }
 0x1f7   : > { %v1308_v52 = vsub.f32 %v1297_v51, %v3182_v6 }
 0x1f8   : > { %v1299_v29 = vpop.f32.mrf.mxu0  ;;  %p2761_p6 = pnand %p2760_p12, %p2754_p0 }
 0x1f9   : > { %v3331_v53 = vsub.f32 %v1308_v52, %v3184_v7  ;;  %v1309_v54 = vsub.f32 %v1299_v29, %v3204_v14  ;;  %v3347_v7 = vld [vmem:[#allocation17 + $0x8] sm:$0xff] }
 0x1fa   : > { %v1301_v56 = vpop.f32.mrf.mxu0 }
 0x1fb   : > { %v1345_v57 = vrot.slane %v3331_v53, %v3165_v61  ;;  %v1389_v58 = vrot.slane %v3331_v53, %v3158_v47  ;;  %v1445_v59 = vrot.slane %v3331_v53, %v3180_v5  ;;  %v3343_v6 = vsub.f32 %v1309_v54, %v3206_v15 }
 0x1fc   : > { %v1302_v14 = vpop.f32.mrf.mxu0  ;;  %v1501_v63 = vrot.slane %v3331_v53, %v3187_v8  ;;  %v1557_v30 = vrot.slane %v3331_v53, %v3190_v9  ;;  %v1613_v0 = vrot.slane %v3331_v53, %v3193_v10  ;;  %v3359_v15 = vrot.slane %v3331_v53, %v3196_v11 }
 0x1fd   : > { %v1350_v1 = vmul.f32 %v1345_v57, %v3334_v55  ;;  %v1394_v2 = vmul.f32 %v1389_v58, %v3334_v55  ;;  %v1349_v3 = vrot.slane %v3343_v6, %v3165_v61  ;;  %v1393_v4 = vrot.slane %v3343_v6, %v3158_v47 }
 0x1fe   : > { %v1449_v17 = vrot.slane %v3343_v6, %v3180_v5  ;;  %v1352_v19 = vmul.f32 %v1345_v57, %v3345_v60  ;;  %v1396_v20 = vmul.f32 %v1389_v58, %v3345_v60  ;;  %v1450_v21 = vmul.f32 %v1445_v59, %v3334_v55 }
 0x1ff   : > { %v1402_v25 = vrot.slane %v1394_v2, 1  ;;  %v1351_v26 = vmul.f32 %v1349_v3, %v3347_v7  ;;  %v1395_v31 = vmul.f32 %v1393_v4, %v3347_v7  ;;  %v1353_v32 = vmul.f32 %v1349_v3, %v3349_v62 }
 0x200   : > { %v1397_v61 = vmul.f32 %v1393_v4, %v3349_v62  ;;  %v1404_v33 = vrot.slane %v1396_v20, 1  ;;  %v1451_v47 = vmul.f32 %v1449_v17, %v3347_v7  ;;  %v1452_v5 = vmul.f32 %v1445_v59, %v3345_v60 }
 0x201   : > { %v1403_v34 = vrot.slane %v1395_v31, 1  ;;  %v1410_v35 = vadd.f32 %v1402_v25, %v1350_v1  ;;  %v1453_v36 = vmul.f32 %v1449_v17, %v3349_v62  ;;  %v1458_v37 = vrot.slane %v1450_v21, 2 }
 0x202   : > { %v1405_v28 = vrot.slane %v1397_v61, 1  ;;  %v1412_v12 = vadd.f32 %v1404_v33, %v1352_v19  ;;  %v1459_v38 = vrot.slane %v1451_v47, 2  ;;  %v1460_v39 = vrot.slane %v1452_v5, 2 }
 0x203   : > { %v1411_v40 = vadd.f32 %v1403_v34, %v1351_v26  ;;  %v1461_v22 = vrot.slane %v1453_v36, 2  ;;  %v1466_v41 = vadd.f32 %v1458_v37, %v1410_v35  ;;  %v1505_v13 = vrot.slane %v3343_v6, %v3187_v8 }
 0x204   : > { %v1413_v43 = vadd.f32 %v1405_v28, %v1353_v32  ;;  %v1468_v23 = vadd.f32 %v1460_v39, %v1412_v12  ;;  %v1506_v44 = vmul.f32 %v1501_v63, %v3334_v55  ;;  %v1508_v45 = vmul.f32 %v1501_v63, %v3345_v60 }
 0x205   : > { %v1467_v24 = vadd.f32 %v1459_v38, %v1411_v40  ;;  %v1507_v27 = vmul.f32 %v1505_v13, %v3347_v7  ;;  %v1509_v46 = vmul.f32 %v1505_v13, %v3349_v62  ;;  %v1561_v42 = vrot.slane %v3343_v6, %v3190_v9 }
 0x206   : > { %v1469_v48 = vadd.f32 %v1461_v22, %v1413_v43  ;;  %v1514_v49 = vrot.slane %v1506_v44, 3  ;;  %v1516_v50 = vrot.slane %v1508_v45, 3  ;;  %v1562_v51 = vmul.f32 %v1557_v30, %v3334_v55 }
 0x207   : > { %v1515_v8 = vrot.slane %v1507_v27, 3  ;;  %v1517_v52 = vrot.slane %v1509_v46, 3  ;;  %v1563_v29 = vmul.f32 %v1561_v42, %v3347_v7  ;;  %v1564_v54 = vmul.f32 %v1557_v30, %v3345_v60 }
 0x208   : > { %v1522_v56 = vadd.f32 %v1514_v49, %v1466_v41  ;;  %v1524_v57 = vadd.f32 %v1516_v50, %v1468_v23  ;;  %v1565_v58 = vmul.f32 %v1561_v42, %v3349_v62  ;;  %v1570_v59 = vrot.slane %v1562_v51, 4 }
 0x209   : > { %v1523_v14 = vadd.f32 %v1515_v8, %v1467_v24  ;;  %v1525_v63 = vadd.f32 %v1517_v52, %v1469_v48  ;;  %v1571_v1 = vrot.slane %v1563_v29, 4  ;;  %v1572_v9 = vrot.slane %v1564_v54, 4 }
 0x20a   : > { %v1573_v2 = vrot.slane %v1565_v58, 4  ;;  %v1578_v3 = vadd.f32 %v1570_v59, %v1522_v56  ;;  %v1617_v4 = vrot.slane %v3343_v6, %v3193_v10  ;;  %v1618_v17 = vmul.f32 %v1613_v0, %v3334_v55 }
 0x20b   : > { %v1579_v19 = vadd.f32 %v1571_v1, %v1523_v14  ;;  %v1580_v20 = vadd.f32 %v1572_v9, %v1524_v57  ;;  %v1620_v30 = vmul.f32 %v1613_v0, %v3345_v60  ;;  %v1673_v21 = vrot.slane %v3343_v6, %v3196_v11 }
 0x20c   : > { %v1581_v25 = vadd.f32 %v1573_v2, %v1525_v63  ;;  %v1619_v26 = vmul.f32 %v1617_v4, %v3347_v7  ;;  %v1621_v31 = vmul.f32 %v1617_v4, %v3349_v62  ;;  %v1626_v32 = vrot.slane %v1618_v17, 5 }
 0x20d   : > { %v1628_v61 = vrot.slane %v1620_v30, 5  ;;  %v1674_v33 = vmul.f32 %v3359_v15, %v3334_v55  ;;  %v1675_v10 = vmul.f32 %v1673_v21, %v3347_v7  ;;  %v1676_v47 = vmul.f32 %v3359_v15, %v3345_v60 }
 0x20e   : > { %v1627_v5 = vrot.slane %v1619_v26, 5  ;;  %v1629_v0 = vrot.slane %v1621_v31, 5  ;;  %v1634_v34 = vadd.f32 %v1626_v32, %v1578_v3  ;;  %v1677_v11 = vmul.f32 %v1673_v21, %v3349_v62 }
 0x20f   : > { %v1636_v35 = vadd.f32 %v1628_v61, %v1580_v20  ;;  %v1682_v36 = vrot.slane %v1674_v33, 6  ;;  %v1684_v12 = vrot.slane %v1676_v47, 6  ;;  %v1725_v38 = vrot.slane %v3331_v53, %v3209_v16 }
 0x210   : > { %v1635_v37 = vadd.f32 %v1627_v5, %v1579_v19  ;;  %v1637_v28 = vadd.f32 %v1629_v0, %v1581_v25  ;;  %v1683_v39 = vrot.slane %v1675_v10, 6  ;;  %v1685_v40 = vrot.slane %v1677_v11, 6 }
 0x211   : > { %v1729_v22 = vrot.slane %v3343_v6, %v3209_v16  ;;  %v1690_v41 = vadd.f32 %v1682_v36, %v1634_v34  ;;  %v1692_v15 = vadd.f32 %v1684_v12, %v1636_v35  ;;  %v1730_v13 = vmul.f32 %v1725_v38, %v3334_v55 }
 0x212   : > { %v1732_v43 = vmul.f32 %v1725_v38, %v3345_v60  ;;  %v1691_v23 = vadd.f32 %v1683_v39, %v1635_v37  ;;  %v1693_v44 = vadd.f32 %v1685_v40, %v1637_v28 }
 0x213   : > { %v1731_v45 = vmul.f32 %v1729_v22, %v3347_v7  ;;  %v1733_v24 = vmul.f32 %v1729_v22, %v3349_v62  ;;  %v1738_v27 = vrot.slane %v1730_v13, 7 }
 0x214   : > { %v1740_v46 = vrot.slane %v1732_v43, 7 }
 0x215   : > { %v1739_v53 = vrot.slane %v1731_v45, 7  ;;  %v1741_v42 = vrot.slane %v1733_v24, 7  ;;  %v1746_v48 = vadd.f32 %v1738_v27, %v1690_v41 }
 0x216   : > { %v1748_v6 = vadd.f32 %v1740_v46, %v1692_v15 }
 0x217   : > { %v1747_v16 = vadd.f32 %v1739_v53, %v1691_v23  ;;  %v1749_v49 = vadd.f32 %v1741_v42, %v1693_v44 }
 0x219   : > { %v1789_v55 = vcombine.low %v1746_v48, %v1747_v16  ;;  %v1797_v50 = vcombine.low %v1748_v6, %v1749_v49 }
 0x21b   : > { %v1804_v60 = vrot.slane %v1797_v50, %v3293_v18  ;;  %v1796_v51 = vrot.slane %v1789_v55, %v3293_v18 }
 0x21d   : > { %v1807_v7 = vrot.slane %v1804_v60, 7 }
 0x21f   : > { %v1808_v62 = vsel %vm1775_vm0, %v1807_v7, %v1796_v51 }
 0x220   : > { %v1809_v8 = vsel %vm1777_vm1, %v1807_v7, %v1808_v62 }
 0x221   : > { %v1810_v52 = vsel %vm1779_vm2, %v1807_v7, %v1809_v8 }
 0x222   : > { %v1811_v29 = vsel %vm1781_vm3, %v1807_v7, %v1810_v52 }
 0x223   : > { %1813 = vst [vmem:[%s550_s7] sm:$0xf] %v1811_v29 }
 0x224   : > { %2764 = shalt.err (!%p2761_p6)
}
 0x225   : > { %s2765_s16 = scalar_lea.hbm %s3425_s27, 64  ;;  %s2769_s22 = scalar_lea.hbm %s3477_s10, 256 }
 0x226   : > { %p2766_p11 = scmp.ne.s32.totalorder %s3425_s27, %s2765_s16  ;;  %p2770_p5 = scmp.lt.s32.totalorder %s3425_s27, %s3477_s10 }
 0x227   : > { %p2771_p10 = scmp.lt.s32.totalorder %s2769_s22, %s2765_s16 }
 0x228   : > { %p2767_p8 = pnand %p2766_p11, %p3537_p2 }
 0x229   : > { %p2772_p13 = por %p2771_p10, %p2770_p5 }
 0x22a   : > { %p2768_p7 = pneg %p2767_p8 }
 0x22c   : > { %p2773_p3 = pnand %p2772_p13, %p2768_p7 }
 0x22e   : > { %2776 = shalt.err (!%p2773_p3)
}
 0x22f   : > { %2228 = dma.vmem_to_hbm [thread:$0]  (%p3537_p2), %s1853_s11, 64, %s3425_s27, %s1820_s5  }
 0x230 PF: > { %s3538_s0 = sld [smem:[#allocation29_spill]]  ;;  %p2282_p1 = scmp.ge.s32.totalorder %s2855_s18, 2 }
 0x231   : > { %s3539_s12 = sld [smem:[#allocation33_spill]] }
 0x236   : > { %s1864_s20 = sand.u32 1, %s3538_s0  }
 0x237   : > { %p3540_p0 = scmp.ne.s32.totalorder %s3539_s12, 0  ;;  %s1865_s21 = scalar_lea.sflag [#allocation6], %s1864_s20 }
 0x239   : > { %p2261_p4 = pnand %p2282_p1, %p3540_p0 }
 0x23b   : > { %p2262_p9 = pneg %p2261_p4 }
 0x23d   : > { %2826 = dma.done.wait (%p2262_p9), %s1865_s21, 64  }
 0x23e   : > { %2828 = vsyncadd (%p2262_p9), %s1865_s21, 4294967232  ;;  %s1874_s23 = scalar_lea.sflag [#allocation20], %s1864_s20 }
 0x23f   : > { %2830 = dma.done.wait (%p2262_p9), %s1874_s23, 64  }
 0x240   : > { %2832 = vsyncadd (%p2262_p9), %s1874_s23, 4294967232  ;;  %s31_s18 = sadd.s32 1, %s2855_s18   ;;  %s3541_s24 = sld [smem:[#allocation30_spill]] }
 0x241   : > { %p28_p12 = scmp.ge.s32.totalorder %s31_s18, 6   ;;  %s3542_s15 = sld [smem:[#allocation32_spill]] }
 0x242   : > { %s3543_s7 = sld [smem:[#allocation31_spill]]  ;;  %s3544_s13 = smov %s2839_s14 }
 0x243   : > { %s3546_s16 = smov %s2851_s17 }
 0x244   :  { %30 = sbr.rel (!%p28_p12) target bundleno = 16 (0x10), region = 162 }
 0x246   : > { %s3545_s14 = smov %s3541_s24 }
 0x248   : > { %s3547_s17 = smov %s3543_s7 }
 0x249   :  { %1879 = vsyncpa [#allocation5], 1 }
 0x24a   :  { %1881 = vsyncpa [#allocation5 + $0x1], 1 }
 0x24b   :  { %1882 = vsyncpa [#allocation8], 1 }
 0x24c   :  { %1883 = vsyncpa [#allocation13], 1 }
 0x24d   :  { %1884 = vsyncpa [#allocation16], 1 }
 0x24e   :  { %1885 = vsyncpa [#allocation6], 1 }
 0x24f   :  { %1887 = vsyncpa [#allocation6 + $0x1], 1 }
 0x250   :  { %1888 = vsyncpa [#allocation20], 1 }
 0x251   :  { %1890 = vsyncpa [#allocation20 + $0x1], 1 }

</bundles_post_ra>
